<compile_context>
chip_gen: v7x
topology: tpu7x:2x2x1
jax: 0.10.0
libtpu: 0.0.40
codegen_flags: <defaults>
</compile_context>

<pallas_src>
import jax
import jax.numpy as jnp
from jax import lax
from jax.experimental import pallas as pl
from jax.experimental.pallas import tpu as pltpu


# Per-tile VMEM budget (each tile is double-buffered by the Pallas pipeline).
# Conservative default that fits every generation's scoped-VMEM default
# (v5e 16 MiB raised to 32 below / v6e 32 MiB / v7x 32 MiB of 64 MiB physical).
# On v6e there is headroom to raise _BLOCK_BUDGET_BYTES to ~8-16 MiB and
# _VMEM_LIMIT_BYTES to 64-96 MiB for fewer, larger pipeline steps; keep the
# small values on v7x.
_BLOCK_BUDGET_BYTES = 2 * 1024 * 1024
_VMEM_LIMIT_BYTES = 32 * 1024 * 1024


def _channel_tile(c, bytes_per_channel):
    """Largest channel tile that divides c, is a multiple of 8 (or equals c),
    and roughly respects the per-tile VMEM budget."""
    ct = c
    while (ct * bytes_per_channel > _BLOCK_BUDGET_BYTES
           and ct % 2 == 0 and (ct // 2) % 8 == 0):
        ct //= 2
    return ct


def _spatial_tile(hwd, ct, itemsize):
    """Flattened-spatial tile: a multiple of 128 dividing hwd when possible
    (lane-dense, unmasked vector stores), otherwise the full extent."""
    if hwd % 128 != 0:
        return hwd
    t = hwd
    while ct * t * itemsize > _BLOCK_BUDGET_BYTES and t % 256 == 0:
        t //= 2
    return t


def _top3_mean(v, axis):
    """Mean of the 3 largest entries along `axis` (duplicates counted
    separately, matching torch.topk).  Keeps the reduced axis with size 1.
    NOTE: assumes v.shape[axis] >= 3 (torch.topk(k=3) would error otherwise)."""
    n = v.shape[axis]
    iota = lax.broadcasted_iota(jnp.int32, v.shape, axis)
    neg = jnp.finfo(v.dtype).min
    total = jnp.zeros(v.shape[:axis] + (1,) + v.shape[axis + 1:], v.dtype)
    cur = v
    for t in range(3):
        m = jnp.max(cur, axis=axis, keepdims=True)
        total = total + m
        if t < 2:
            # knock out exactly the first occurrence of the current max
            first = jnp.min(jnp.where(cur == m, iota, n), axis=axis, keepdims=True)
            cur = jnp.where(iota == first, neg, cur)
    return total * (1.0 / 3.0)


def _pool_kernel(xb_ref, pooled_ref):
    # xb_ref: (c_tile, 27, nblk)  -- 27 on sublanes, nblk on lanes (lane dense)
    xb = xb_ref[...].astype(jnp.float32)
    blk = _top3_mean(xb, axis=1)            # (c_tile, 1, nblk) per-block top-3 mean
    pooled_ref[...] = _top3_mean(blk, axis=2)   # (c_tile, 1, 1)  top-3 mean over blocks


def _rescale_kernel(x_ref, s_ref, o_ref):
    # x_ref: (c_tile, s_tile) flat-volume tile; s_ref: (c_tile, 1) sigmoid scales.
    # Multiply in the input dtype (bf16 stays bf16 on v6e/v7x; f32 on v5e).
    o_ref[...] = x_ref[...] * s_ref[...].astype(x_ref.dtype)


def _make_blocks(x):
    """Zero-pad h/w/d to multiples of 3 (like F.pad with zeros) and tile into a
    lane-dense (b, c, 27, nblk) patch tensor (27 window offsets, nblk blocks)."""
    b, c, h, w, d = x.shape
    ph, pw, pd = (-h) % 3, (-w) % 3, (-d) % 3
    if ph or pw or pd:
        x = jnp.pad(x, ((0, 0), (0, 0), (0, ph), (0, pw), (0, pd)))
    H, W, D = h + ph, w + pw, d + pd
    xb = x.reshape(b, c, H // 3, 3, W // 3, 3, D // 3, 3)
    # window offsets (3,3,3) -> the 27 axis (sublanes); block index -> nblk (lanes)
    xb = xb.transpose(0, 1, 3, 5, 7, 2, 4, 6)
    return xb.reshape(b, c, 27, (H // 3) * (W // 3) * (D // 3))


@jax.jit
def senet_forward(x, w1, w2):
    b, c, h, w, d = x.shape
    hwd = h * w * d
    itemsize = jnp.dtype(x.dtype).itemsize

    # ---- stage 1: two-level top-3 pooling (Pallas, channel-tiled) ----------
    xb = _make_blocks(x)                       # (b, c, 27, nblk)
    nblk = xb.shape[-1]
    ct_pool = _channel_tile(c, 27 * nblk * itemsize)
    pooled = pl.pallas_call(
        _pool_kernel,
        out_shape=jax.ShapeDtypeStruct((b, c, 1, 1), jnp.float32),
        grid=(b, c // ct_pool),
        in_specs=[pl.BlockSpec((None, ct_pool, 27, nblk),
                               lambda bi, ci: (bi, ci, 0, 0))],
        out_specs=pl.BlockSpec((None, ct_pool, 1, 1),
                               lambda bi, ci: (bi, ci, 0, 0)),
        compiler_params=pltpu.CompilerParams(
            dimension_semantics=("parallel", "parallel"),
            vmem_limit_bytes=_VMEM_LIMIT_BYTES),
    )(xb)

    # ---- stage 2: squeeze-excitation FCs (tiny, batched over b -> plain XLA) ---
    p = pooled.reshape(b, c)
    h1 = jnp.maximum(p @ w1.astype(jnp.float32).T, 0.0)           # ReLU
    scale = jax.nn.sigmoid(h1 @ w2.astype(jnp.float32).T)          # (b, c) f32

    # ---- stage 3: channel-wise rescale (Pallas, channel x spatial tiled) -------
    xf = x.reshape(b, c, hwd)                 # free view, no data movement
    ct_res = _channel_tile(c, hwd * itemsize)
    st = _spatial_tile(hwd, ct_res, itemsize)
    out = pl.pallas_call(
        _rescale_kernel,
        out_shape=jax.ShapeDtypeStruct((b, c, hwd), x.dtype),
        grid=(b, c // ct_res, hwd // st),
        in_specs=[
            pl.BlockSpec((None, ct_res, st), lambda bi, ci, si: (bi, ci, si)),
            pl.BlockSpec((None, ct_res, 1), lambda bi, ci, si: (bi, ci, 0)),
        ],
        out_specs=pl.BlockSpec((None, ct_res, st), lambda bi, ci, si: (bi, ci, si)),
        compiler_params=pltpu.CompilerParams(
            dimension_semantics=("parallel", "parallel", "parallel"),
            vmem_limit_bytes=_VMEM_LIMIT_BYTES),
    )(xf, scale.reshape(b, c, 1))
    return out.reshape(b, c, h, w, d)


def senet_ref(x, w1, w2):
    """Pure-JAX reference mirroring the PyTorch module (for verification)."""
    xb = _make_blocks(x)                                          # (b, c, 27, nblk)
    top3_blk = jnp.sort(xb, axis=2)[:, :, -3:, :].mean(axis=2)    # (b, c, nblk)
    pooled = jnp.sort(top3_blk, axis=-1)[..., -3:].mean(-1)       # (b, c)
    h1 = jnp.maximum(pooled @ w1.T, 0.0)
    scale = jax.nn.sigmoid(h1 @ w2.T)                             # (b, c)
    return x * scale[:, :, None, None, None]


if __name__ == "__main__":
    key = jax.random.PRNGKey(0)
    ratio = 4

    for shape in [(2, 8, 6, 6, 6), (1, 16, 5, 6, 7)]:
        b, c, h, w, d = shape
        key, k1, k2, k3 = jax.random.split(key, 4)
        x = jax.random.normal(k1, (b, c, h, w, d), dtype=jnp.float32)
        # nn.Linear(channel, channel//ratio, bias=False) -> weight (out, in)
        w1 = 0.5 * jax.random.normal(k2, (c // ratio, c), dtype=jnp.float32)
        w2 = 0.5 * jax.random.normal(k3, (c, c // ratio), dtype=jnp.float32)

        out = jax.block_until_ready(senet_forward(x, w1, w2))
        ref = senet_ref(x, w1, w2)
        assert out.shape == (b, c, h, w, d)
        assert jnp.allclose(out, ref, atol=1e-5, rtol=1e-5), f"mismatch vs reference for {shape}"

    print("KERNEL_OK")
</pallas_src>

<mosaic_0001>
module attributes {stable_mosaic.version = 11 : i64} {
  func.func @_pool_kernel(%arg0: i32, %arg1: i32, %arg2: memref<1x8x27x8xf32, #tpu.memory_space<vmem>>, %arg3: memref<1x8x1x1xf32, #tpu.memory_space<vmem>>) attributes {dimension_semantics = [#tpu.dimension_semantics<parallel>, #tpu.dimension_semantics<parallel>], iteration_bounds = array<i64: 2, 1>, scalar_prefetch = 0 : i64, scratch_operands = 0 : i64, tpu.core_type = #tpu.core_type<tc>, window_params = [{transform_indices = @transform_0, window_bounds = array<i64: 1, 8, 27, 8>}, {transform_indices = @transform_1, window_bounds = array<i64: 1, 8, 1, 1>}]} {
    %c0 = arith.constant 0 : index
    %c0_0 = arith.constant 0 : index
    %c0_1 = arith.constant 0 : index
    %c0_2 = arith.constant 0 : index
    %0 = vector.load %arg2[%c0, %c0_0, %c0_1, %c0_2] : memref<1x8x27x8xf32, #tpu.memory_space<vmem>>, vector<1x8x27x8xf32>
    %1 = vector.shape_cast %0 : vector<1x8x27x8xf32> to vector<8x27x8xf32>
    %2 = tpu.iota {dimensions = array<i32: 1>} : vector<8x27x8xi32>
    %cst = arith.constant 0.000000e+00 : f32
    %3 = vector.broadcast %cst : f32 to vector<8x1x8xf32>
    %cst_3 = arith.constant dense<0xFF800000> : vector<8x8xf32>
    %4 = vector.multi_reduction <maximumf>, %1, %cst_3 [1] : vector<8x27x8xf32> to vector<8x8xf32>
    %5 = vector.shape_cast %4 : vector<8x8xf32> to vector<8x1x8xf32>
    %6 = arith.addf %3, %5 : vector<8x1x8xf32>
    %7 = vector.broadcast %5 : vector<8x1x8xf32> to vector<8x27x8xf32>
    %8 = arith.cmpf oeq, %1, %7 : vector<8x27x8xf32>
    %c27_i32 = arith.constant 27 : i32
    %9 = vector.broadcast %c27_i32 : i32 to vector<8x27x8xi32>
    %10 = arith.select %8, %2, %9 : vector<8x27x8xi1>, vector<8x27x8xi32>
    %cst_4 = arith.constant dense<2147483647> : vector<8x8xi32>
    %11 = vector.multi_reduction <minsi>, %10, %cst_4 [1] : vector<8x27x8xi32> to vector<8x8xi32>
    %12 = vector.shape_cast %11 : vector<8x8xi32> to vector<8x1x8xi32>
    %13 = vector.broadcast %12 : vector<8x1x8xi32> to vector<8x27x8xi32>
    %14 = arith.cmpi eq, %2, %13 : vector<8x27x8xi32>
    %cst_5 = arith.constant -3.40282347E+38 : f32
    %15 = vector.broadcast %cst_5 : f32 to vector<8x27x8xf32>
    %16 = arith.select %14, %15, %1 : vector<8x27x8xi1>, vector<8x27x8xf32>
    %cst_6 = arith.constant dense<0xFF800000> : vector<8x8xf32>
    %17 = vector.multi_reduction <maximumf>, %16, %cst_6 [1] : vector<8x27x8xf32> to vector<8x8xf32>
    %18 = vector.shape_cast %17 : vector<8x8xf32> to vector<8x1x8xf32>
    %19 = arith.addf %6, %18 : vector<8x1x8xf32>
    %20 = vector.broadcast %18 : vector<8x1x8xf32> to vector<8x27x8xf32>
    %21 = arith.cmpf oeq, %16, %20 : vector<8x27x8xf32>
    %c27_i32_7 = arith.constant 27 : i32
    %22 = vector.broadcast %c27_i32_7 : i32 to vector<8x27x8xi32>
    %23 = arith.select %21, %2, %22 : vector<8x27x8xi1>, vector<8x27x8xi32>
    %cst_8 = arith.constant dense<2147483647> : vector<8x8xi32>
    %24 = vector.multi_reduction <minsi>, %23, %cst_8 [1] : vector<8x27x8xi32> to vector<8x8xi32>
    %25 = vector.shape_cast %24 : vector<8x8xi32> to vector<8x1x8xi32>
    %26 = vector.broadcast %25 : vector<8x1x8xi32> to vector<8x27x8xi32>
    %27 = arith.cmpi eq, %2, %26 : vector<8x27x8xi32>
    %cst_9 = arith.constant -3.40282347E+38 : f32
    %28 = vector.broadcast %cst_9 : f32 to vector<8x27x8xf32>
    %29 = arith.select %27, %28, %16 : vector<8x27x8xi1>, vector<8x27x8xf32>
    %cst_10 = arith.constant dense<0xFF800000> : vector<8x8xf32>
    %30 = vector.multi_reduction <maximumf>, %29, %cst_10 [1] : vector<8x27x8xf32> to vector<8x8xf32>
    %31 = vector.shape_cast %30 : vector<8x8xf32> to vector<8x1x8xf32>
    %32 = arith.addf %19, %31 : vector<8x1x8xf32>
    %cst_11 = arith.constant 0.333333343 : f32
    %33 = vector.broadcast %cst_11 : f32 to vector<8x1x8xf32>
    %34 = arith.mulf %32, %33 : vector<8x1x8xf32>
    %35 = tpu.iota {dimensions = array<i32: 2>} : vector<8x1x8xi32>
    %cst_12 = arith.constant 0.000000e+00 : f32
    %36 = vector.broadcast %cst_12 : f32 to vector<8x1x1xf32>
    %cst_13 = arith.constant dense<0xFF800000> : vector<8x1xf32>
    %37 = vector.multi_reduction <maximumf>, %34, %cst_13 [2] : vector<8x1x8xf32> to vector<8x1xf32>
    %38 = vector.shape_cast %37 : vector<8x1xf32> to vector<8x1x1xf32>
    %39 = arith.addf %36, %38 : vector<8x1x1xf32>
    %40 = vector.broadcast %38 : vector<8x1x1xf32> to vector<8x1x8xf32>
    %41 = arith.cmpf oeq, %34, %40 : vector<8x1x8xf32>
    %c8_i32 = arith.constant 8 : i32
    %42 = vector.broadcast %c8_i32 : i32 to vector<8x1x8xi32>
    %43 = arith.select %41, %35, %42 : vector<8x1x8xi1>, vector<8x1x8xi32>
    %cst_14 = arith.constant dense<2147483647> : vector<8x1xi32>
    %44 = vector.multi_reduction <minsi>, %43, %cst_14 [2] : vector<8x1x8xi32> to vector<8x1xi32>
    %45 = vector.shape_cast %44 : vector<8x1xi32> to vector<8x1x1xi32>
    %46 = vector.broadcast %45 : vector<8x1x1xi32> to vector<8x1x8xi32>
    %47 = arith.cmpi eq, %35, %46 : vector<8x1x8xi32>
    %cst_15 = arith.constant -3.40282347E+38 : f32
    %48 = vector.broadcast %cst_15 : f32 to vector<8x1x8xf32>
    %49 = arith.select %47, %48, %34 : vector<8x1x8xi1>, vector<8x1x8xf32>
    %cst_16 = arith.constant dense<0xFF800000> : vector<8x1xf32>
    %50 = vector.multi_reduction <maximumf>, %49, %cst_16 [2] : vector<8x1x8xf32> to vector<8x1xf32>
    %51 = vector.shape_cast %50 : vector<8x1xf32> to vector<8x1x1xf32>
    %52 = arith.addf %39, %51 : vector<8x1x1xf32>
    %53 = vector.broadcast %51 : vector<8x1x1xf32> to vector<8x1x8xf32>
    %54 = arith.cmpf oeq, %49, %53 : vector<8x1x8xf32>
    %c8_i32_17 = arith.constant 8 : i32
    %55 = vector.broadcast %c8_i32_17 : i32 to vector<8x1x8xi32>
    %56 = arith.select %54, %35, %55 : vector<8x1x8xi1>, vector<8x1x8xi32>
    %cst_18 = arith.constant dense<2147483647> : vector<8x1xi32>
    %57 = vector.multi_reduction <minsi>, %56, %cst_18 [2] : vector<8x1x8xi32> to vector<8x1xi32>
    %58 = vector.shape_cast %57 : vector<8x1xi32> to vector<8x1x1xi32>
    %59 = vector.broadcast %58 : vector<8x1x1xi32> to vector<8x1x8xi32>
    %60 = arith.cmpi eq, %35, %59 : vector<8x1x8xi32>
    %cst_19 = arith.constant -3.40282347E+38 : f32
    %61 = vector.broadcast %cst_19 : f32 to vector<8x1x8xf32>
    %62 = arith.select %60, %61, %49 : vector<8x1x8xi1>, vector<8x1x8xf32>
    %cst_20 = arith.constant dense<0xFF800000> : vector<8x1xf32>
    %63 = vector.multi_reduction <maximumf>, %62, %cst_20 [2] : vector<8x1x8xf32> to vector<8x1xf32>
    %64 = vector.shape_cast %63 : vector<8x1xf32> to vector<8x1x1xf32>
    %65 = arith.addf %52, %64 : vector<8x1x1xf32>
    %cst_21 = arith.constant 0.333333343 : f32
    %66 = vector.broadcast %cst_21 : f32 to vector<8x1x1xf32>
    %67 = arith.mulf %65, %66 : vector<8x1x1xf32>
    %c0_22 = arith.constant 0 : index
    %c0_23 = arith.constant 0 : index
    %c0_24 = arith.constant 0 : index
    %c0_25 = arith.constant 0 : index
    %68 = vector.load %arg3[%c0_22, %c0_23, %c0_24, %c0_25] : memref<1x8x1x1xf32, #tpu.memory_space<vmem>>, vector<1x8x1x1xf32>
    %69 = vector.shape_cast %68 : vector<1x8x1x1xf32> to vector<8x1x1xf32>
    %70 = vector.shape_cast %67 : vector<8x1x1xf32> to vector<1x8x1x1xf32>
    tpu.vector_store %arg3[%c0_22, %c0_23, %c0_24, %c0_25], %70 {strides = array<i32>} : memref<1x8x1x1xf32, #tpu.memory_space<vmem>>, vector<1x8x1x1xf32>,
    return
  }
  func.func @transform_0(%arg0: i32, %arg1: i32) -> (i32, i32, i32, i32) {
    %c0_i32 = arith.constant 0 : i32
    %c0_i32_0 = arith.constant 0 : i32
    %c0_i32_1 = arith.constant 0 : i32
    return %arg0, %arg1, %c0_i32, %c0_i32_0 : i32, i32, i32, i32
  }
  func.func @transform_1(%arg0: i32, %arg1: i32) -> (i32, i32, i32, i32) {
    %c0_i32 = arith.constant 0 : i32
    %c0_i32_0 = arith.constant 0 : i32
    %c0_i32_1 = arith.constant 0 : i32
    return %arg0, %arg1, %c0_i32, %c0_i32_0 : i32, i32, i32, i32
  }
}

module attributes {stable_mosaic.version = 11 : i64} {
  func.func @_rescale_kernel(%arg0: i32, %arg1: i32, %arg2: i32, %arg3: memref<1x8x216xf32, #tpu.memory_space<vmem>>, %arg4: memref<1x8x1xf32, #tpu.memory_space<vmem>>, %arg5: memref<1x8x216xf32, #tpu.memory_space<vmem>>) attributes {dimension_semantics = [#tpu.dimension_semantics<parallel>, #tpu.dimension_semantics<parallel>, #tpu.dimension_semantics<parallel>], iteration_bounds = array<i64: 2, 1, 1>, scalar_prefetch = 0 : i64, scratch_operands = 0 : i64, tpu.core_type = #tpu.core_type<tc>, window_params = [{transform_indices = @transform_0, window_bounds = array<i64: 1, 8, 216>}, {transform_indices = @transform_1, window_bounds = array<i64: 1, 8, 1>}, {transform_indices = @transform_2, window_bounds = array<i64: 1, 8, 216>}]} {
    %c0 = arith.constant 0 : index
    %c0_0 = arith.constant 0 : index
    %c0_1 = arith.constant 0 : index
    %0 = vector.load %arg3[%c0, %c0_0, %c0_1] : memref<1x8x216xf32, #tpu.memory_space<vmem>>, vector<1x8x216xf32>
    %1 = vector.shape_cast %0 : vector<1x8x216xf32> to vector<8x216xf32>
    %c0_2 = arith.constant 0 : index
    %c0_3 = arith.constant 0 : index
    %c0_4 = arith.constant 0 : index
    %2 = vector.load %arg4[%c0_2, %c0_3, %c0_4] : memref<1x8x1xf32, #tpu.memory_space<vmem>>, vector<1x8x1xf32>
    %3 = vector.shape_cast %2 : vector<1x8x1xf32> to vector<8x1xf32>
    %4 = vector.broadcast %3 : vector<8x1xf32> to vector<8x216xf32>
    %5 = arith.mulf %1, %4 : vector<8x216xf32>
    %c0_5 = arith.constant 0 : index
    %c0_6 = arith.constant 0 : index
    %c0_7 = arith.constant 0 : index
    %6 = vector.load %arg5[%c0_5, %c0_6, %c0_7] : memref<1x8x216xf32, #tpu.memory_space<vmem>>, vector<1x8x216xf32>
    %7 = vector.shape_cast %6 : vector<1x8x216xf32> to vector<8x216xf32>
    %8 = vector.shape_cast %5 : vector<8x216xf32> to vector<1x8x216xf32>
    tpu.vector_store %arg5[%c0_5, %c0_6, %c0_7], %8 {strides = array<i32>} : memref<1x8x216xf32, #tpu.memory_space<vmem>>, vector<1x8x216xf32>,
    return
  }
  func.func @transform_0(%arg0: i32, %arg1: i32, %arg2: i32) -> (i32, i32, i32) {
    %c0_i32 = arith.constant 0 : i32
    return %arg0, %arg1, %arg2 : i32, i32, i32
  }
  func.func @transform_1(%arg0: i32, %arg1: i32, %arg2: i32) -> (i32, i32, i32) {
    %c0_i32 = arith.constant 0 : i32
    %c0_i32_0 = arith.constant 0 : i32
    return %arg0, %arg1, %c0_i32 : i32, i32, i32
  }
  func.func @transform_2(%arg0: i32, %arg1: i32, %arg2: i32) -> (i32, i32, i32) {
    %c0_i32 = arith.constant 0 : i32
    return %arg0, %arg1, %arg2 : i32, i32, i32
  }
}

</mosaic_0001>

<bundles_post_ra>
// kernel: senet_forward.2
= control target key start
LH: loop header
LB: loop body
LE: loop exit
PB: predicated region body
PF: predicated region fallthrough
CT: control target
= control target key end

     0   :  { %s1680_s6 = smov 0   ;;  %s1682_s7 = smov 0   ;;  %s2873_s0 = inlined_call_operand.vmem [shape: f32[2,8,27,8], index: 0, kind: input, shape index: {}]   ;;  %s2874_s1 = inlined_call_operand.vmem [shape: f32[2,8,1,1], index: 1, kind: output, shape index: {}]  }
   0x1   :  { %s1684_s8 = smov 0  }
   0x2 LB: > { %s23_s9 = sadd.s32 1, %s1664_s7  ;;  %p1607_p0 = scmp.ge.s32.totalorder %s1668_s8, 1  ;;  %s1668_s8 = sphi %s1684_s8, %s11_s8   ;;  %s1664_s7 = sphi %s1682_s7, %s2884_s7   ;;  %s1660_s6 = sphi %s1680_s6, %s2883_s6  }
   0x3   : > { %p25_p1 = scmp.ge.s32.totalorder %s23_s9, 2  ;;  %p109_p2 = scmp.lt.s32.totalorder %s1668_s8, 3 }
   0x5   : > { %s2886_s9 = smov (%p25_p1, %s23_s9), 0  ;;  %p110_p3 = pnand %p1607_p0, %p109_p2 }
   0x6   : > { %p138_p4 = scmp.lt.s32.totalorder (!%p110_p3), %s1660_s6, 1  ;;  %v2875_v0 = vlaneseq (!%p110_p3)  ;;  %vm194_vm0 = vcmask (!%p110_p3), 64512   ;;  %vm200_vm1 = vcmask (!%p110_p3), 59392  }
   0x7   : > { %113 = sbr.rel (%p110_p3) target bundleno = 1326 (0x52e), region = 24 }
   0x8   : > { %v1701_v1 = vshrl.u32 (!%p110_p3), %v2875_v0, 7 }
   0xa   : > { %v1719_v5 = vadd.s32 (!%p110_p3), 8, %v1701_v1  ;;  %v1722_v6 = vadd.s32 (!%p110_p3), 16, %v1701_v1 }
   0xe   : > { %s2888_s6 = smov (!%p138_p4, %s1660_s6), 1 }
   0xf   : > { %s1613_s10 = sshll.u32 %s2888_s6, 8  ;;  %s1610_s14 = sshll.u32 %s2888_s6, 3 }
  0x10   : > { %s1707_s13 = scalar_lea.vmem %s2873_s0, %s1613_s10  ;;  %s2828_s17 = scalar_lea.vmem %s2874_s1, %s1610_s14 }
  0x11   : > { %v1710_v2 = vld [vmem:[%s1707_s13] sm:$0xff]  ;;  %v1713_v3 = vld [vmem:[%s1707_s13 + $0x8] sm:$0xff]  ;;  %v1716_v4 = vld [vmem:[%s1707_s13 + $0x10] sm:$0xff] }
  0x12   : > { %v1725_v7 = vld [vmem:[%s1707_s13 + $0x18] sm:$0x7]  ;;  %v195_v8 = vsel %vm194_vm0, %v1710_v2, -inf  ;;  %v196_v9 = vsel %vm194_vm0, %v1713_v3, -inf  ;;  %v198_v10 = vsel %vm194_vm0, %v1716_v4, -inf  ;;  %v1734_v11 = vld [vmem:[%s1707_s13 + $0x40] sm:$0xff] }
  0x13   : > { %v197_v12 = vmax.f32 %v195_v8, %v196_v9  ;;  %v201_v13 = vsel %vm200_vm1, %v1725_v7, -inf  ;;  %v1739_v14 = vld [vmem:[%s1707_s13 + $0x48] sm:$0xff]  ;;  %v1742_v15 = vld [vmem:[%s1707_s13 + $0x50] sm:$0xff]  ;;  %v1745_v16 = vld [vmem:[%s1707_s13 + $0x58] sm:$0x7]  ;;  %v222_v17 = vsel %vm194_vm0, %v1734_v11, -inf }
  0x14   : > { %v223_v18 = vsel %vm194_vm0, %v1739_v14, -inf  ;;  %v225_v19 = vsel %vm194_vm0, %v1742_v15, -inf  ;;  %v227_v20 = vsel %vm200_vm1, %v1745_v16, -inf  ;;  %v1756_v21 = vld [vmem:[%s1707_s13 + $0x20] sm:$0xff]  ;;  %v1759_v22 = vld [vmem:[%s1707_s13 + $0x28] sm:$0xff]  ;;  %v1762_v23 = vld [vmem:[%s1707_s13 + $0x30] sm:$0xff] }
  0x15   : > { %v199_v24 = vmax.f32 %v197_v12, %v198_v10  ;;  %v224_v25 = vmax.f32 %v222_v17, %v223_v18  ;;  %v1765_v26 = vld [vmem:[%s1707_s13 + $0x38] sm:$0x7]  ;;  %v209_v27 = vsel %vm194_vm0, %v1756_v21, -inf  ;;  %v210_v28 = vsel %vm194_vm0, %v1759_v22, -inf  ;;  %v1772_v29 = vld [vmem:[%s1707_s13 + $0x60] sm:$0xff]  ;;  %v1775_v30 = vld [vmem:[%s1707_s13 + $0x68] sm:$0xff] }
  0x16   : > { %v211_v31 = vmax.f32 %v209_v27, %v210_v28  ;;  %v212_v32 = vsel %vm194_vm0, %v1762_v23, -inf  ;;  %v214_v33 = vsel %vm200_vm1, %v1765_v26, -inf  ;;  %v1782_v34 = vld [vmem:[%s1707_s13 + $0x70] sm:$0xff]  ;;  %v1785_v35 = vld [vmem:[%s1707_s13 + $0x78] sm:$0x7]  ;;  %v235_v36 = vsel %vm194_vm0, %v1772_v29, -inf }
  0x17   : > { %v202_v37 = vmax.f32 %v199_v24, %v201_v13  ;;  %v226_v38 = vmax.f32 %v224_v25, %v225_v19  ;;  %v236_v39 = vsel %vm194_vm0, %v1775_v30, -inf  ;;  %v238_v40 = vsel %vm194_vm0, %v1782_v34, -inf  ;;  %v1794_v41 = vld [vmem:[%s1707_s13 + $0x80] sm:$0xff]  ;;  %v1797_v42 = vld [vmem:[%s1707_s13 + $0x88] sm:$0xff]  ;;  %v1800_v43 = vld [vmem:[%s1707_s13 + $0x90] sm:$0xff] }
  0x18   : > { %v213_v44 = vmax.f32 %v211_v31, %v212_v32  ;;  %v237_v45 = vmax.f32 %v235_v36, %v236_v39  ;;  %v240_v46 = vsel %vm200_vm1, %v1785_v35, -inf  ;;  %v1805_v47 = vld [vmem:[%s1707_s13 + $0x98] sm:$0x7]  ;;  %v248_v48 = vsel %vm194_vm0, %v1794_v41, -inf  ;;  %v1810_v49 = vld [vmem:[%s1707_s13 + $0xa0] sm:$0xff]  ;;  %v1813_v50 = vld [vmem:[%s1707_s13 + $0xa8] sm:$0xff] }
  0x19   : > { %v203_v51 = vrot.slane %v202_v37, 4  ;;  %v228_v52 = vmax.f32 %v226_v38, %v227_v20  ;;  %v249_v53 = vsel %vm194_vm0, %v1797_v42, -inf  ;;  %v251_v54 = vsel %vm194_vm0, %v1800_v43, -inf  ;;  %v1822_v59 = vld [vmem:[%s1707_s13 + $0xb0] sm:$0xff]  ;;  %v1825_v60 = vld [vmem:[%s1707_s13 + $0xb8] sm:$0x7] }
  0x1a   : > { %v215_v55 = vmax.f32 %v213_v44, %v214_v33  ;;  %v239_v56 = vmax.f32 %v237_v45, %v238_v40  ;;  %v250_v57 = vmax.f32 %v248_v48, %v249_v53  ;;  %v253_v58 = vsel %vm200_vm1, %v1805_v47, -inf  ;;  %v1832_v17 = vld [vmem:[%s1707_s13 + $0xc0] sm:$0xff]  ;;  %v1835_v18 = vld [vmem:[%s1707_s13 + $0xc8] sm:$0xff]  ;;  %v1842_v33 = vld [vmem:[%s1707_s13 + $0xd0] sm:$0xff] }
  0x1b   : > { %v204_v61 = vmax.f32 %v202_v37, %v203_v51  ;;  %v229_v62 = vrot.slane %v228_v52, 4  ;;  %v261_v63 = vsel %vm194_vm0, %v1810_v49, -inf  ;;  %v262_v8 = vsel %vm194_vm0, %v1813_v50, -inf }
  0x1c   : > { %v216_v9 = vrot.slane %v215_v55, 4  ;;  %v241_v10 = vmax.f32 %v239_v56, %v240_v46  ;;  %v252_v12 = vmax.f32 %v250_v57, %v251_v54  ;;  %v263_v13 = vmax.f32 %v261_v63, %v262_v8 }
  0x1d   : > { %v205_v19 = vrot.slane %v204_v61, 2  ;;  %v230_v20 = vmax.f32 %v228_v52, %v229_v62  ;;  %v264_v24 = vsel %vm194_vm0, %v1822_v59, -inf  ;;  %v266_v25 = vsel %vm200_vm1, %v1825_v60, -inf }
  0x1e   : > { %v217_v27 = vmax.f32 %v215_v55, %v216_v9  ;;  %v242_v28 = vrot.slane %v241_v10, 4  ;;  %v254_v31 = vmax.f32 %v252_v12, %v253_v58  ;;  %v265_v32 = vmax.f32 %v263_v13, %v264_v24 }
  0x1f   : > { %v206_v36 = vmax.f32 %v204_v61, %v205_v19  ;;  %v231_v37 = vrot.slane %v230_v20, 2  ;;  %v274_v38 = vsel %vm194_vm0, %v1832_v17, -inf  ;;  %v275_v39 = vsel %vm194_vm0, %v1835_v18, -inf }
  0x20   : > { %v218_v40 = vrot.slane %v217_v27, 2  ;;  %v243_v44 = vmax.f32 %v241_v10, %v242_v28  ;;  %v255_v45 = vrot.slane %v254_v31, 4  ;;  %v1848_v46 = vmax.f32 %v265_v32, %v266_v25 }
  0x21   : > { %v207_v48 = vrot.slane %v206_v36, 1  ;;  %v232_v51 = vmax.f32 %v230_v20, %v231_v37  ;;  %v276_v52 = vmax.f32 %v274_v38, %v275_v39  ;;  %v277_v53 = vsel %vm194_vm0, %v1842_v33, -inf }
  0x22   : > { %v1853_v54 = vadd.s32 24, %v1701_v1  ;;  %v219_v55 = vmax.f32 %v217_v27, %v218_v40  ;;  %v244_v56 = vrot.slane %v243_v44, 2  ;;  %v1855_v57 = vmax.f32 %v254_v31, %v255_v45 }
  0x23   : > { %v1857_v58 = vmax.f32 %v206_v36, %v207_v48  ;;  %v233_v61 = vrot.slane %v232_v51, 1  ;;  %v268_v62 = vrot.slane %v1848_v46, 4  ;;  %v1863_v10 = vmax.f32 %v276_v52, %v277_v53 }
  0x24   : > { %v220_v63 = vrot.slane %v219_v55, 1  ;;  %v1860_v8 = vmax.f32 %v243_v44, %v244_v56  ;;  %v257_v9 = vrot.slane %v1855_v57, 2 }
  0x25   : > { %vm308_vm2 = vcmp.eq.f32.partialorder %v1710_v2, %v1857_v58  ;;  %vm309_vm3 = vcmp.eq.f32.partialorder %v1713_v3, %v1857_v58  ;;  %vm310_vm4 = vcmp.eq.f32.partialorder %v1716_v4, %v1857_v58  ;;  %vm311_vm5 = vcmp.eq.f32.partialorder %v1725_v7, %v1857_v58 }
  0x26   : > { %v340_v12 = vsel %vm308_vm2, %v1701_v1, 27  ;;  %v341_v13 = vsel %vm309_vm3, %v1719_v5, 27  ;;  %v342_v19 = vsel %vm310_vm4, %v1722_v6, 27  ;;  %v343_v20 = vsel %vm311_vm5, %v1853_v54, 27 }
  0x27   : > { %v372_v24 = vsel %vm194_vm0, %v340_v12, 2147483647  ;;  %v373_v25 = vsel %vm194_vm0, %v341_v13, 2147483647  ;;  %v376_v27 = vsel %vm194_vm0, %v342_v19, 2147483647  ;;  %v1880_v28 = vmax.f32 %v232_v51, %v233_v61 }
  0x28   : > { %vm374_vm6 = vcmp.lt.s32.totalorder %v372_v24, %v373_v25  ;;  %v379_v31 = vsel %vm200_vm1, %v343_v20, 2147483647  ;;  %v1883_v32 = vmax.f32 %v219_v55, %v220_v63  ;;  %v246_v36 = vrot.slane %v1860_v8, 1 }
  0x29   : > { %v375_v37 = vsel %vm374_vm6, %v372_v24, %v373_v25  ;;  %vm316_vm7 = vcmp.eq.f32.partialorder %v1734_v11, %v1880_v28  ;;  %vm317_vm8 = vcmp.eq.f32.partialorder %v1739_v14, %v1880_v28  ;;  %vm318_vm9 = vcmp.eq.f32.partialorder %v1742_v15, %v1880_v28 }
  0x2a   : > { %vm377_vm10 = vcmp.lt.s32.totalorder %v375_v37, %v376_v27  ;;  %vm319_vm11 = vcmp.eq.f32.partialorder %v1745_v16, %v1880_v28  ;;  %v348_v38 = vsel %vm316_vm7, %v1701_v1, 27  ;;  %v349_v39 = vsel %vm317_vm8, %v1719_v5, 27 }
  0x2b   : > { %v378_v40 = vsel %vm377_vm10, %v375_v37, %v376_v27  ;;  %v350_v44 = vsel %vm318_vm9, %v1722_v6, 27  ;;  %v351_v45 = vsel %vm319_vm11, %v1853_v54, 27  ;;  %v410_v48 = vsel %vm194_vm0, %v348_v38, 2147483647  ;;  %v1918_v37 = vld [vmem:[%s1707_s13 + $0xd8] sm:$0x7] }
  0x2c   : > { %vm380_vm12 = vcmp.lt.s32.totalorder %v378_v40, %v379_v31  ;;  %v411_v51 = vsel %vm194_vm0, %v349_v39, 2147483647  ;;  %v414_v52 = vsel %vm194_vm0, %v350_v44, 2147483647  ;;  %v417_v53 = vsel %vm200_vm1, %v351_v45, 2147483647 }
  0x2d   : > { %v381_v55 = vsel %vm380_vm12, %v378_v40, %v379_v31  ;;  %vm412_vm13 = vcmp.lt.s32.totalorder %v410_v48, %v411_v51  ;;  %vm312_vm14 = vcmp.eq.f32.partialorder %v1756_v21, %v1883_v32  ;;  %vm313_vm15 = vcmp.eq.f32.partialorder %v1759_v22, %v1883_v32 }
  0x2e   : > { %v382_v56 = vrot.slane %v381_v55, 4  ;;  %v413_v61 = vsel %vm412_vm13, %v410_v48, %v411_v51  ;;  %vm314_vm2 = vcmp.eq.f32.partialorder %v1762_v23, %v1883_v32  ;;  %vm315_vm3 = vcmp.eq.f32.partialorder %v1765_v26, %v1883_v32 }
  0x2f   : > { %vm415_vm4 = vcmp.lt.s32.totalorder %v413_v61, %v414_v52  ;;  %v344_v63 = vsel %vm312_vm14, %v1701_v1, 27  ;;  %v345_v12 = vsel %vm313_vm15, %v1719_v5, 27  ;;  %v346_v13 = vsel %vm314_vm2, %v1722_v6, 27 }
  0x30   : > { %vm383_vm5 = vcmp.lt.s32.totalorder %v381_v55, %v382_v56  ;;  %v416_v19 = vsel %vm415_vm4, %v413_v61, %v414_v52  ;;  %v347_v20 = vsel %vm315_vm3, %v1853_v54, 27  ;;  %v391_v24 = vsel %vm194_vm0, %v344_v63, 2147483647 }
  0x31   : > { %v384_v25 = vsel %vm383_vm5, %v381_v55, %v382_v56  ;;  %vm418_vm6 = vcmp.lt.s32.totalorder %v416_v19, %v417_v53  ;;  %v392_v27 = vsel %vm194_vm0, %v345_v12, 2147483647  ;;  %v395_v31 = vsel %vm194_vm0, %v346_v13, 2147483647 }
  0x32   : > { %v385_v38 = vrot.slane %v384_v25, 2  ;;  %v419_v39 = vsel %vm418_vm6, %v416_v19, %v417_v53  ;;  %vm393_vm7 = vcmp.lt.s32.totalorder %v391_v24, %v392_v27  ;;  %v1921_v40 = vmax.f32 %v1848_v46, %v268_v62 }
  0x33   : > { %v420_v44 = vrot.slane %v419_v39, 4  ;;  %v394_v45 = vsel %vm393_vm7, %v391_v24, %v392_v27  ;;  %v398_v48 = vsel %vm200_vm1, %v347_v20, 2147483647  ;;  %v1925_v51 = vmax.f32 %v1860_v8, %v246_v36 }
  0x34   : > { %vm386_vm8 = vcmp.lt.s32.totalorder %v384_v25, %v385_v38  ;;  %vm396_vm9 = vcmp.lt.s32.totalorder %v394_v45, %v395_v31  ;;  %v1930_v52 = vmax.f32 %v1855_v57, %v257_v9  ;;  %v1934_v53 = vsel %vm200_vm1, %v1918_v37, -inf }
  0x35   : > { %v387_v46 = vsel %vm386_vm8, %v384_v25, %v385_v38  ;;  %vm421_vm10 = vcmp.lt.s32.totalorder %v419_v39, %v420_v44  ;;  %v397_v62 = vsel %vm396_vm9, %v394_v45, %v395_v31  ;;  %vm320_vm11 = vcmp.eq.f32.partialorder %v1772_v29, %v1925_v51 }
  0x36   : > { %v388_v55 = vrot.slane %v387_v46, 1  ;;  %v422_v8 = vsel %vm421_vm10, %v419_v39, %v420_v44  ;;  %vm399_vm12 = vcmp.lt.s32.totalorder %v397_v62, %v398_v48  ;;  %vm321_vm13 = vcmp.eq.f32.partialorder %v1775_v30, %v1925_v51 }
  0x37   : > { %v423_v36 = vrot.slane %v422_v8, 2  ;;  %v400_v56 = vsel %vm399_vm12, %v397_v62, %v398_v48  ;;  %vm322_vm14 = vcmp.eq.f32.partialorder %v1782_v34, %v1925_v51  ;;  %v270_v57 = vrot.slane %v1921_v40, 2 }
  0x38   : > { %vm389_vm15 = vcmp.lt.s32.totalorder %v387_v46, %v388_v55  ;;  %v401_v9 = vrot.slane %v400_v56, 4  ;;  %vm323_vm2 = vcmp.eq.f32.partialorder %v1785_v35, %v1925_v51  ;;  %v352_v61 = vsel %vm320_vm11, %v1701_v1, 27 }
  0x39   : > { %v390_v63 = vsel %vm389_vm15, %v387_v46, %v388_v55  ;;  %vm424_vm3 = vcmp.lt.s32.totalorder %v422_v8, %v423_v36  ;;  %v353_v12 = vsel %vm321_vm13, %v1719_v5, 27  ;;  %v354_v13 = vsel %vm322_vm14, %v1722_v6, 27 }
  0x3a   : > { %vm524_vm4 = vcmp.eq.s32.totalorder %v1701_v1, %v390_v63  ;;  %vm525_vm5 = vcmp.eq.s32.totalorder %v1719_v5, %v390_v63  ;;  %vm526_vm6 = vcmp.eq.s32.totalorder %v1722_v6, %v390_v63  ;;  %vm527_vm7 = vcmp.eq.s32.totalorder %v1853_v54, %v390_v63 }
  0x3b   : > { %v1953_v19 = vsel %vm524_vm4, -3.4028235e+38, %v1710_v2  ;;  %v1956_v20 = vsel %vm525_vm5, -3.4028235e+38, %v1713_v3  ;;  %v1959_v24 = vsel %vm526_vm6, -3.4028235e+38, %v1716_v4  ;;  %v425_v25 = vsel %vm424_vm3, %v422_v8, %v423_v36 }
  0x3c   : > { %v1962_v27 = vsel %vm527_vm7, -3.4028235e+38, %v1725_v7  ;;  %v588_v31 = vsel %vm194_vm0, %v1953_v19, -inf  ;;  %v589_v38 = vsel %vm194_vm0, %v1956_v20, -inf  ;;  %v591_v2 = vsel %vm194_vm0, %v1959_v24, -inf }
  0x3d   : > { %v590_v39 = vmax.f32 %v588_v31, %v589_v38  ;;  %v426_v44 = vrot.slane %v425_v25, 1  ;;  %vm402_vm8 = vcmp.lt.s32.totalorder %v400_v56, %v401_v9  ;;  %v355_v3 = vsel %vm323_vm2, %v1853_v54, 27 }
  0x3e   : > { %v593_v4 = vsel %vm200_vm1, %v1962_v27, -inf  ;;  %v403_v7 = vsel %vm402_vm8, %v400_v56, %v401_v9  ;;  %v429_v45 = vsel %vm194_vm0, %v352_v61, 2147483647  ;;  %v430_v48 = vsel %vm194_vm0, %v353_v12, 2147483647 }
  0x3f   : > { %v592_v46 = vmax.f32 %v590_v39, %v591_v2  ;;  %vm427_vm9 = vcmp.lt.s32.totalorder %v425_v25, %v426_v44  ;;  %vm431_vm10 = vcmp.lt.s32.totalorder %v429_v45, %v430_v48  ;;  %v433_v62 = vsel %vm194_vm0, %v354_v13, 2147483647 }
  0x40   : > { %v428_v55 = vsel %vm427_vm9, %v425_v25, %v426_v44  ;;  %v404_v8 = vrot.slane %v403_v7, 2  ;;  %v432_v36 = vsel %vm431_vm10, %v429_v45, %v430_v48  ;;  %v436_v63 = vsel %vm200_vm1, %v355_v3, 2147483647 }
  0x41   : > { %v594_v31 = vmax.f32 %v592_v46, %v593_v4  ;;  %vm532_vm11 = vcmp.eq.s32.totalorder %v1701_v1, %v428_v55  ;;  %vm533_vm12 = vcmp.eq.s32.totalorder %v1719_v5, %v428_v55  ;;  %vm534_vm13 = vcmp.eq.s32.totalorder %v1722_v6, %v428_v55 }
  0x42   : > { %vm535_vm14 = vcmp.eq.s32.totalorder %v1853_v54, %v428_v55  ;;  %v1985_v56 = vsel %vm532_vm11, -3.4028235e+38, %v1734_v11  ;;  %v1988_v9 = vsel %vm533_vm12, -3.4028235e+38, %v1739_v14  ;;  %v1991_v61 = vsel %vm534_vm13, -3.4028235e+38, %v1742_v15 }
  0x43   : > { %v595_v12 = vrot.slane %v594_v31, 4  ;;  %v1994_v13 = vsel %vm535_vm14, -3.4028235e+38, %v1745_v16  ;;  %v614_v25 = vsel %vm194_vm0, %v1985_v56, -inf  ;;  %v615_v38 = vsel %vm194_vm0, %v1988_v9, -inf }
  0x44   : > { %v616_v2 = vmax.f32 %v614_v25, %v615_v38  ;;  %v617_v11 = vsel %vm194_vm0, %v1991_v61, -inf  ;;  %vm405_vm15 = vcmp.lt.s32.totalorder %v403_v7, %v404_v8  ;;  %v259_v14 = vrot.slane %v1930_v52, 1 }
  0x45   : > { %v596_v39 = vmax.f32 %v594_v31, %v595_v12  ;;  %v619_v15 = vsel %vm200_vm1, %v1994_v13, -inf  ;;  %v406_v44 = vsel %vm405_vm15, %v403_v7, %v404_v8  ;;  %vm434_vm2 = vcmp.lt.s32.totalorder %v432_v36, %v433_v62 }
  0x46   : > { %v618_v16 = vmax.f32 %v616_v2, %v617_v11  ;;  %v407_v3 = vrot.slane %v406_v44, 1  ;;  %v435_v4 = vsel %vm434_vm2, %v432_v36, %v433_v62  ;;  %v2007_v48 = vmax.f32 %v1863_v10, %v1934_v53 }
  0x47   : > { %v597_v45 = vrot.slane %v596_v39, 2  ;;  %vm437_vm3 = vcmp.lt.s32.totalorder %v435_v4, %v436_v63  ;;  %v2010_v25 = vmax.f32 %v1930_v52, %v259_v14  ;;  %v2015_v7 = vmax.f32 %v1921_v40, %v270_v57 }
  0x48   : > { %v620_v46 = vmax.f32 %v618_v16, %v619_v15  ;;  %vm408_vm4 = vcmp.lt.s32.totalorder %v406_v44, %v407_v3  ;;  %v438_v55 = vsel %vm437_vm3, %v435_v4, %v436_v63 }
  0x49   : > { %v598_v31 = vmax.f32 %v596_v39, %v597_v45  ;;  %v409_v12 = vsel %vm408_vm4, %v406_v44, %v407_v3  ;;  %v439_v38 = vrot.slane %v438_v55, 4  ;;  %vm324_vm9 = vcmp.eq.f32.partialorder %v1794_v41, %v2010_v25 }
  0x4a   : > { %v621_v62 = vrot.slane %v620_v46, 4  ;;  %vm528_vm5 = vcmp.eq.s32.totalorder %v1701_v1, %v409_v12  ;;  %vm529_vm6 = vcmp.eq.s32.totalorder %v1719_v5, %v409_v12  ;;  %vm530_vm7 = vcmp.eq.s32.totalorder %v1722_v6, %v409_v12 }
  0x4b   : > { %v599_v10 = vrot.slane %v598_v31, 1  ;;  %vm531_vm8 = vcmp.eq.s32.totalorder %v1853_v54, %v409_v12  ;;  %v2022_v52 = vsel %vm528_vm5, -3.4028235e+38, %v1756_v21  ;;  %v2025_v53 = vsel %vm529_vm6, -3.4028235e+38, %v1759_v22 }
  0x4c   : > { %v622_v8 = vmax.f32 %v620_v46, %v621_v62  ;;  %v2028_v40 = vsel %vm530_vm7, -3.4028235e+38, %v1762_v23  ;;  %v2031_v57 = vsel %vm531_vm8, -3.4028235e+38, %v1765_v26  ;;  %v601_v36 = vsel %vm194_vm0, %v2022_v52, -inf }
  0x4d   : > { %v600_v63 = vmax.f32 %v598_v31, %v599_v10  ;;  %v602_v2 = vsel %vm194_vm0, %v2025_v53, -inf  ;;  %vm325_vm10 = vcmp.eq.f32.partialorder %v1797_v42, %v2010_v25  ;;  %v604_v23 = vsel %vm194_vm0, %v2028_v40, -inf }
  0x4e   : > { %v623_v21 = vrot.slane %v622_v8, 2  ;;  %v603_v22 = vmax.f32 %v601_v36, %v602_v2  ;;  %v606_v26 = vsel %vm200_vm1, %v2031_v57, -inf  ;;  %vm2048_vm14 = vcmp.lt.s32.totalorder %v438_v55, %v439_v38 }
  0x4f   : > { %vm700_vm11 = vcmp.eq.f32.partialorder %v1953_v19, %v600_v63  ;;  %vm701_vm12 = vcmp.eq.f32.partialorder %v1956_v20, %v600_v63  ;;  %vm702_vm13 = vcmp.eq.f32.partialorder %v1959_v24, %v600_v63  ;;  %vm703_vm15 = vcmp.eq.f32.partialorder %v1962_v27, %v600_v63 }
  0x50   : > { %v732_v14 = vsel %vm700_vm11, %v1701_v1, 27  ;;  %v733_v39 = vsel %vm701_vm12, %v1719_v5, 27  ;;  %v734_v15 = vsel %vm702_vm13, %v1722_v6, 27  ;;  %v735_v44 = vsel %vm703_vm15, %v1853_v54, 27 }
  0x51   : > { %v764_v16 = vsel %vm194_vm0, %v732_v14, 2147483647  ;;  %v765_v3 = vsel %vm194_vm0, %v733_v39, 2147483647  ;;  %v624_v4 = vmax.f32 %v622_v8, %v623_v21  ;;  %v768_v45 = vsel %vm194_vm0, %v734_v15, 2147483647 }
  0x52   : > { %vm766_vm2 = vcmp.lt.s32.totalorder %v764_v16, %v765_v3  ;;  %v605_v46 = vmax.f32 %v603_v22, %v604_v23  ;;  %vm326_vm3 = vcmp.eq.f32.partialorder %v1800_v43, %v2010_v25  ;;  %v356_v31 = vsel %vm324_vm9, %v1701_v1, 27 }
  0x53   : > { %v767_v12 = vsel %vm766_vm2, %v764_v16, %v765_v3  ;;  %v771_v62 = vsel %vm200_vm1, %v735_v44, 2147483647  ;;  %v625_v10 = vrot.slane %v624_v4, 1  ;;  %v441_v36 = vsel %vm2048_vm14, %v438_v55, %v439_v38 }
  0x54   : > { %vm769_vm4 = vcmp.lt.s32.totalorder %v767_v12, %v768_v45  ;;  %v607_v8 = vmax.f32 %v605_v46, %v606_v26  ;;  %v442_v2 = vrot.slane %v441_v36, 2  ;;  %v357_v21 = vsel %vm325_vm10, %v1719_v5, 27 }
  0x55   : > { %v2074_v22 = vadd.f32 %v600_v63, %v1857_v58  ;;  %v770_v23 = vsel %vm769_vm4, %v767_v12, %v768_v45  ;;  %v2076_v14 = vmax.f32 %v624_v4, %v625_v10  ;;  %vm327_vm5 = vcmp.eq.f32.partialorder %v1805_v47, %v2010_v25 }
  0x56   : > { %vm772_vm6 = vcmp.lt.s32.totalorder %v770_v23, %v771_v62  ;;  %v608_v11 = vrot.slane %v607_v8, 4  ;;  %vm2080_vm7 = vcmp.lt.s32.totalorder %v441_v36, %v442_v2  ;;  %v448_v38 = vsel %vm194_vm0, %v356_v31, 2147483647 }
  0x57   : > { %v773_v26 = vsel %vm772_vm6, %v770_v23, %v771_v62  ;;  %vm708_vm8 = vcmp.eq.f32.partialorder %v1985_v56, %v2076_v14  ;;  %vm709_vm9 = vcmp.eq.f32.partialorder %v1988_v9, %v2076_v14  ;;  %v449_v58 = vsel %vm194_vm0, %v357_v21, 2147483647 }
  0x58   : > { %v774_v63 = vrot.slane %v773_v26, 4  ;;  %vm710_vm10 = vcmp.eq.f32.partialorder %v1991_v61, %v2076_v14  ;;  %vm711_vm11 = vcmp.eq.f32.partialorder %v1994_v13, %v2076_v14  ;;  %v740_v39 = vsel %vm708_vm8, %v1701_v1, 27 }
  0x59   : > { %v741_v15 = vsel %vm709_vm9, %v1719_v5, 27  ;;  %v742_v44 = vsel %vm710_vm10, %v1722_v6, 27  ;;  %v743_v16 = vsel %vm711_vm11, %v1853_v54, 27  ;;  %v802_v3 = vsel %vm194_vm0, %v740_v39, 2147483647 }
  0x5a   : > { %vm775_vm12 = vcmp.lt.s32.totalorder %v773_v26, %v774_v63  ;;  %v803_v4 = vsel %vm194_vm0, %v741_v15, 2147483647  ;;  %v806_v45 = vsel %vm194_vm0, %v742_v44, 2147483647  ;;  %v809_v46 = vsel %vm200_vm1, %v743_v16, 2147483647 }
  0x5b   : > { %v776_v31 = vsel %vm775_vm12, %v773_v26, %v774_v63  ;;  %vm804_vm13 = vcmp.lt.s32.totalorder %v802_v3, %v803_v4  ;;  %v609_v12 = vmax.f32 %v607_v8, %v608_v11  ;;  %v444_v62 = vsel %vm2080_vm7, %v441_v36, %v442_v2 }
  0x5c   : > { %v777_v10 = vrot.slane %v776_v31, 2  ;;  %v805_v21 = vsel %vm804_vm13, %v802_v3, %v803_v4  ;;  %v445_v23 = vrot.slane %v444_v62, 1  ;;  %vm450_vm14 = vcmp.lt.s32.totalorder %v448_v38, %v449_v58 }
  0x5d   : > { %vm807_vm15 = vcmp.lt.s32.totalorder %v805_v21, %v806_v45  ;;  %v610_v0 = vrot.slane %v609_v12, 2  ;;  %v358_v39 = vsel %vm326_vm3, %v1722_v6, 27  ;;  %v2112_v26 = vsel %vm327_vm5, %v1853_v54, 27 }
  0x5e   : > { %vm778_vm2 = vcmp.lt.s32.totalorder %v776_v31, %v777_v10  ;;  %v808_v8 = vsel %vm807_vm15, %v805_v21, %v806_v45  ;;  %vm446_vm4 = vcmp.lt.s32.totalorder %v444_v62, %v445_v23  ;;  %v2114_v36 = vsel %vm450_vm14, %v448_v38, %v449_v58 }
  0x5f   : > { %v779_v2 = vsel %vm778_vm2, %v776_v31, %v777_v10  ;;  %vm810_vm6 = vcmp.lt.s32.totalorder %v808_v8, %v809_v46  ;;  %v611_v11 = vmax.f32 %v609_v12, %v610_v0  ;;  %v447_v55 = vsel %vm446_vm4, %v444_v62, %v445_v23 }
  0x60   : > { %v780_v63 = vrot.slane %v779_v2, 1  ;;  %v811_v15 = vsel %vm810_vm6, %v808_v8, %v809_v46  ;;  %vm536_vm7 = vcmp.eq.s32.totalorder %v1701_v1, %v447_v55  ;;  %vm537_vm3 = vcmp.eq.s32.totalorder %v1719_v5, %v447_v55 }
  0x61   : > { %v812_v44 = vrot.slane %v811_v15, 4  ;;  %v612_v16 = vrot.slane %v611_v11, 1  ;;  %vm538_vm5 = vcmp.eq.s32.totalorder %v1722_v6, %v447_v55  ;;  %v2120_v3 = vsel %vm194_vm0, %v358_v39, 2147483647 }
  0x62   : > { %vm781_vm8 = vcmp.lt.s32.totalorder %v779_v2, %v780_v63  ;;  %vm539_vm9 = vcmp.eq.s32.totalorder %v1853_v54, %v447_v55  ;;  %v2124_v38 = vsel %vm536_vm7, -3.4028235e+38, %v1772_v29  ;;  %v2127_v0 = vsel %vm537_vm3, -3.4028235e+38, %v1775_v30 }
  0x63   : > { %v782_v58 = vsel %vm781_vm8, %v779_v2, %v780_v63  ;;  %vm813_vm10 = vcmp.lt.s32.totalorder %v811_v15, %v812_v44  ;;  %v2129_v4 = vmax.f32 %v611_v11, %v612_v16  ;;  %v2132_v45 = vsel %vm538_vm5, -3.4028235e+38, %v1782_v34 }
  0x64   : > { %vm916_vm11 = vcmp.eq.s32.totalorder %v1701_v1, %v782_v58  ;;  %vm917_vm12 = vcmp.eq.s32.totalorder %v1719_v5, %v782_v58  ;;  %vm918_vm13 = vcmp.eq.s32.totalorder %v1722_v6, %v782_v58  ;;  %vm919_vm14 = vcmp.eq.s32.totalorder %v1853_v54, %v782_v58 }
  0x65   : > { %v948_v29 = vsel %vm916_vm11, -3.4028235e+38, %v1953_v19  ;;  %v949_v30 = vsel %vm917_vm12, -3.4028235e+38, %v1956_v20  ;;  %v950_v46 = vsel %vm918_vm13, -3.4028235e+38, %v1959_v24  ;;  %v814_v31 = vsel %vm813_vm10, %v811_v15, %v812_v44 }
  0x66   : > { %v951_v12 = vsel %vm919_vm14, -3.4028235e+38, %v1962_v27  ;;  %v980_v34 = vsel %vm194_vm0, %v948_v29, -inf  ;;  %v981_v62 = vsel %vm194_vm0, %v949_v30, -inf  ;;  %v983_v10 = vsel %vm194_vm0, %v950_v46, -inf }
  0x67   : > { %v982_v21 = vmax.f32 %v980_v34, %v981_v62  ;;  %v985_v23 = vsel %vm200_vm1, %v951_v12, -inf  ;;  %v815_v39 = vrot.slane %v814_v31, 2  ;;  %v2149_v19 = vsel %vm539_vm9, -3.4028235e+38, %v1785_v35 }
  0x68   : > { %vm704_vm15 = vcmp.eq.f32.partialorder %v2022_v52, %v2129_v4  ;;  %vm705_vm2 = vcmp.eq.f32.partialorder %v2025_v53, %v2129_v4  ;;  %vm706_vm4 = vcmp.eq.f32.partialorder %v2028_v40, %v2129_v4  ;;  %vm707_vm6 = vcmp.eq.f32.partialorder %v2031_v57, %v2129_v4 }
  0x69   : > { %vm453_vm7 = vcmp.lt.s32.totalorder %v2114_v36, %v2120_v3  ;;  %v984_v20 = vmax.f32 %v982_v21, %v983_v10  ;;  %vm816_vm3 = vcmp.lt.s32.totalorder %v814_v31, %v815_v39  ;;  %v736_v35 = vsel %vm704_vm15, %v1701_v1, 27 }
  0x6a   : > { %v737_v24 = vsel %vm705_vm2, %v1719_v5, 27  ;;  %v817_v27 = vsel %vm816_vm3, %v814_v31, %v815_v39  ;;  %v738_v8 = vsel %vm706_vm4, %v1722_v6, 27  ;;  %v739_v2 = vsel %vm707_vm6, %v1853_v54, 27 }
  0x6b   : > { %v783_v11 = vsel %vm194_vm0, %v736_v35, 2147483647  ;;  %v986_v55 = vmax.f32 %v984_v20, %v985_v23  ;;  %v818_v63 = vrot.slane %v817_v27, 1  ;;  %v784_v15 = vsel %vm194_vm0, %v737_v24, 2147483647 }
  0x6c   : > { %v787_v44 = vsel %vm194_vm0, %v738_v8, 2147483647  ;;  %vm785_vm5 = vcmp.lt.s32.totalorder %v783_v11, %v784_v15  ;;  %v790_v16 = vsel %vm200_vm1, %v739_v2, 2147483647  ;;  %v627_v58 = vsel %vm194_vm0, %v2124_v38, -inf }
  0x6d   : > { %v628_v29 = vsel %vm194_vm0, %v2127_v0, -inf  ;;  %v987_v30 = vrot.slane %v986_v55, 4  ;;  %vm819_vm8 = vcmp.lt.s32.totalorder %v817_v27, %v818_v63  ;;  %v786_v46 = vsel %vm785_vm5, %v783_v11, %v784_v15 }
  0x6e   : > { %v629_v31 = vmax.f32 %v627_v58, %v628_v29  ;;  %v820_v12 = vsel %vm819_vm8, %v817_v27, %v818_v63  ;;  %vm788_vm9 = vcmp.lt.s32.totalorder %v786_v46, %v787_v44  ;;  %v630_v34 = vsel %vm194_vm0, %v2132_v45, -inf }
  0x6f   : > { %v632_v62 = vsel %vm200_vm1, %v2149_v19, -inf  ;;  %v988_v10 = vmax.f32 %v986_v55, %v987_v30  ;;  %vm924_vm10 = vcmp.eq.s32.totalorder %v1701_v1, %v820_v12  ;;  %vm925_vm11 = vcmp.eq.s32.totalorder %v1719_v5, %v820_v12 }
  0x70   : > { %vm926_vm12 = vcmp.eq.s32.totalorder %v1722_v6, %v820_v12  ;;  %vm927_vm13 = vcmp.eq.s32.totalorder %v1853_v54, %v820_v12  ;;  %v956_v21 = vsel %vm924_vm10, -3.4028235e+38, %v1985_v56  ;;  %v957_v23 = vsel %vm925_vm11, -3.4028235e+38, %v1988_v9 }
  0x71   : > { %v958_v39 = vsel %vm926_vm12, -3.4028235e+38, %v1991_v61  ;;  %v989_v20 = vrot.slane %v988_v10, 2  ;;  %v959_v35 = vsel %vm927_vm13, -3.4028235e+38, %v1994_v13  ;;  %v1006_v24 = vsel %vm194_vm0, %v956_v21, -inf }
  0x72   : > { %v1007_v27 = vsel %vm194_vm0, %v957_v23, -inf  ;;  %v1009_v2 = vsel %vm194_vm0, %v958_v39, -inf  ;;  %v1011_v11 = vsel %vm200_vm1, %v959_v35, -inf  ;;  %v789_v55 = vsel %vm788_vm9, %v786_v46, %v787_v44 }
  0x73   : > { %v1008_v8 = vmax.f32 %v1006_v24, %v1007_v27  ;;  %v990_v63 = vmax.f32 %v988_v10, %v989_v20  ;;  %vm791_vm14 = vcmp.lt.s32.totalorder %v789_v55, %v790_v16  ;;  %v631_v56 = vmax.f32 %v629_v31, %v630_v34 }
  0x74   : > { %v454_v9 = vsel %vm453_vm7, %v2114_v36, %v2120_v3  ;;  %v792_v13 = vsel %vm791_vm14, %v789_v55, %v790_v16  ;;  %v455_v15 = vsel %vm200_vm1, %v2112_v26, 2147483647  ;;  %v272_v58 = vrot.slane %v2015_v7, 1 }
  0x75   : > { %v1010_v61 = vmax.f32 %v1008_v8, %v1009_v2  ;;  %v991_v29 = vrot.slane %v990_v63, 1  ;;  %v793_v30 = vrot.slane %v792_v13, 4  ;;  %v633_v12 = vmax.f32 %v631_v56, %v632_v62 }
  0x76   : > { %vm456_vm15 = vcmp.lt.s32.totalorder %v454_v9, %v455_v15  ;;  %v694_v44 = vadd.f32 %v2076_v14, %v1880_v28  ;;  %v2201_v34 = vmax.f32 %v2015_v7, %v272_v58  ;;  %v281_v56 = vrot.slane %v2007_v48, 4 }
  0x77   : > { %v1012_v46 = vmax.f32 %v1010_v61, %v1011_v11  ;;  %v457_v31 = vsel %vm456_vm15, %v454_v9, %v455_v15  ;;  %v992_v36 = vmax.f32 %v990_v63, %v991_v29  ;;  %vm794_vm2 = vcmp.lt.s32.totalorder %v792_v13, %v793_v30 }
  0x78   : > { %v634_v3 = vrot.slane %v633_v12, 4  ;;  %v458_v16 = vrot.slane %v457_v31, 4  ;;  %v795_v26 = vsel %vm794_vm2, %v792_v13, %v793_v30  ;;  %vm328_vm4 = vcmp.eq.f32.partialorder %v1810_v49, %v2201_v34 }
  0x79   : > { %v1013_v10 = vrot.slane %v1012_v46, 4  ;;  %vm329_vm6 = vcmp.eq.f32.partialorder %v1813_v50, %v2201_v34  ;;  %v1084_v62 = vadd.f32 %v992_v36, %v2074_v22  ;;  %v796_v28 = vrot.slane %v795_v26, 2 }
  0x7a   : > { %v635_v14 = vmax.f32 %v633_v12, %v634_v3  ;;  %vm459_vm7 = vcmp.lt.s32.totalorder %v457_v31, %v458_v16  ;;  %vm330_vm3 = vcmp.eq.f32.partialorder %v1822_v59, %v2201_v34  ;;  %vm331_vm5 = vcmp.eq.f32.partialorder %v1825_v60, %v2201_v34 }
  0x7b   : > { %v1014_v21 = vmax.f32 %v1012_v46, %v1013_v10  ;;  %v460_v7 = vsel %vm459_vm7, %v457_v31, %v458_v16  ;;  %v2212_v23 = vmul.f32 0.33333334, %v1084_v62  ;;  %vm797_vm8 = vcmp.lt.s32.totalorder %v795_v26, %v796_v28 }
  0x7c   : > { %v636_v39 = vrot.slane %v635_v14, 2  ;;  %v461_v20 = vrot.slane %v460_v7, 2  ;;  %v798_v24 = vsel %vm797_vm8, %v795_v26, %v796_v28  ;;  %v360_v22 = vsel %vm328_vm4, %v1701_v1, 27 }
  0x7d   : > { %v1015_v35 = vrot.slane %v1014_v21, 2  ;;  %v361_v27 = vsel %vm329_vm6, %v1719_v5, 27  ;;  %v1102_v8 = vsel %vm194_vm0, %v2212_v23, -inf  ;;  %v799_v2 = vrot.slane %v798_v24, 1 }
  0x7e   : > { %v637_v11 = vmax.f32 %v635_v14, %v636_v39  ;;  %vm462_vm9 = vcmp.lt.s32.totalorder %v460_v7, %v461_v20  ;;  %1103 = vmax.xlane.f32.xlu0 %v1102_v8  ;;  %v362_v49 = vsel %vm330_vm3, %v1722_v6, 27  ;;  %v363_v61 = vsel %vm331_vm5, %v1853_v54, 27 }
  0x7f   : > { %v1016_v55 = vmax.f32 %v1014_v21, %v1015_v35  ;;  %v463_v63 = vsel %vm462_vm9, %v460_v7, %v461_v20  ;;  %vm800_vm10 = vcmp.lt.s32.totalorder %v798_v24, %v799_v2  ;;  %v2234_v58 = vsel %vm194_vm0, %v360_v22, 2147483647 }
  0x80   : > { %v638_v9 = vrot.slane %v637_v11, 1  ;;  %v464_v50 = vrot.slane %v463_v63, 1  ;;  %v801_v15 = vsel %vm800_vm10, %v798_v24, %v799_v2  ;;  %v2237_v29 = vsel %vm194_vm0, %v361_v27, 2147483647 }
  0x81   : > { %v1017_v13 = vrot.slane %v1016_v55, 1  ;;  %vm920_vm11 = vcmp.eq.s32.totalorder %v1701_v1, %v801_v15  ;;  %vm921_vm12 = vcmp.eq.s32.totalorder %v1719_v5, %v801_v15  ;;  %vm922_vm13 = vcmp.eq.s32.totalorder %v1722_v6, %v801_v15 }
  0x82   : > { %vm923_vm14 = vcmp.eq.s32.totalorder %v1853_v54, %v801_v15  ;;  %v952_v60 = vsel %vm920_vm11, -3.4028235e+38, %v2022_v52  ;;  %v953_v30 = vsel %vm921_vm12, -3.4028235e+38, %v2025_v53  ;;  %v954_v12 = vsel %vm922_vm13, -3.4028235e+38, %v2028_v40 }
  0x83   : > { %v1018_v59 = vmax.f32 %v1016_v55, %v1017_v13  ;;  %v955_v46 = vsel %vm923_vm14, -3.4028235e+38, %v2031_v57  ;;  %v993_v31 = vsel %vm194_vm0, %v952_v60, -inf  ;;  %v994_v36 = vsel %vm194_vm0, %v953_v30, -inf  ;;  %v2307_v15 = vld [vmem:[%s1707_s13 + $0xe0] sm:$0xff] }
  0x84   : > { %v996_v3 = vsel %vm194_vm0, %v954_v12, -inf  ;;  %v995_v10 = vmax.f32 %v993_v31, %v994_v36  ;;  %v2250_v26 = vmax.f32 %v637_v11, %v638_v9  ;;  %v471_v62 = vsel %vm194_vm0, %v362_v49, 2147483647  ;;  %v2319_v31 = vld [vmem:[%s1707_s13 + $0xe8] sm:$0xff] }
  0x85   : > { %v1086_v16 = vadd.f32 %v1018_v59, %v694_v44  ;;  %v998_v52 = vsel %vm200_vm1, %v955_v46, -inf  ;;  %vm2254_vm15 = vcmp.lt.s32.totalorder %v463_v63, %v464_v50  ;;  %vm469_vm2 = vcmp.lt.s32.totalorder %v2234_v58, %v2237_v29 }
  0x86   : > { %v2261_v40 = vsel %vm200_vm1, %v363_v61, 2147483647  ;;  %v997_v44 = vmax.f32 %v995_v10, %v996_v3  ;;  %vm712_vm4 = vcmp.eq.f32.partialorder %v2124_v38, %v2250_v26  ;;  %v282_v28 = vmax.f32 %v2007_v48, %v281_v56 }
  0x87   : > { %v2263_v57 = vmul.f32 0.33333334, %v1086_v16  ;;  %vm713_vm6 = vcmp.eq.f32.partialorder %v2127_v0, %v2250_v26  ;;  %vm714_vm7 = vcmp.eq.f32.partialorder %v2132_v45, %v2250_v26  ;;  %vm715_vm3 = vcmp.eq.f32.partialorder %v2149_v19, %v2250_v26 }
  0x88   : > { %v744_v14 = vsel %vm712_vm4, %v1701_v1, 27  ;;  %v999_v7 = vmax.f32 %v997_v44, %v998_v52  ;;  %v745_v39 = vsel %vm713_vm6, %v1719_v5, 27  ;;  %v746_v20 = vsel %vm714_vm7, %v1722_v6, 27 }
  0x89   : > { %v1108_v21 = vsel %vm194_vm0, %v2263_v57, -inf  ;;  %v747_v48 = vsel %vm715_vm3, %v1853_v54, 27  ;;  %v821_v35 = vsel %vm194_vm0, %v744_v14, 2147483647  ;;  %v822_v24 = vsel %vm194_vm0, %v745_v39, 2147483647 }
  0x8a   : > { %1109 = vmax.xlane.f32.xlu1 %v1108_v21  ;;  %v466_v22 = vsel %vm2254_vm15, %v463_v63, %v464_v50  ;;  %v1000_v27 = vrot.slane %v999_v7, 4  ;;  %vm823_vm5 = vcmp.lt.s32.totalorder %v821_v35, %v822_v24  ;;  %v825_v8 = vsel %vm194_vm0, %v746_v20, 2147483647 }
  0x8b   : > { %v828_v2 = vsel %vm200_vm1, %v747_v48, 2147483647  ;;  %v824_v11 = vsel %vm823_vm5, %v821_v35, %v822_v24  ;;  %vm540_vm8 = vcmp.eq.s32.totalorder %v1701_v1, %v466_v22  ;;  %vm541_vm9 = vcmp.eq.s32.totalorder %v1719_v5, %v466_v22  ;;  %v2343_v35 = vld [vmem:[%s1707_s13 + $0xf8] sm:$0x7] }
  0x8c   : > { %vm542_vm10 = vcmp.eq.s32.totalorder %v1722_v6, %v466_v22  ;;  %v1001_v55 = vmax.f32 %v999_v7, %v1000_v27  ;;  %vm826_vm11 = vcmp.lt.s32.totalorder %v824_v11, %v825_v8  ;;  %vm543_vm12 = vcmp.eq.s32.totalorder %v1853_v54, %v466_v22  ;;  %v2334_v7 = vld [vmem:[%s1707_s13 + $0xf0] sm:$0xff] }
  0x8d   : > { %v2291_v63 = vsel %vm540_vm8, -3.4028235e+38, %v1794_v41  ;;  %v827_v49 = vsel %vm826_vm11, %v824_v11, %v825_v8  ;;  %v2294_v56 = vsel %vm541_vm9, -3.4028235e+38, %v1797_v42  ;;  %v2297_v9 = vsel %vm542_vm10, -3.4028235e+38, %v1800_v43 }
  0x8e   : > { %v2300_v50 = vsel %vm543_vm12, -3.4028235e+38, %v1805_v47  ;;  %v1002_v61 = vrot.slane %v1001_v55, 2  ;;  %vm829_vm13 = vcmp.lt.s32.totalorder %v827_v49, %v828_v2  ;;  %v640_v13 = vsel %vm194_vm0, %v2291_v63, -inf }
  0x8f   : > { %v641_v41 = vsel %vm194_vm0, %v2294_v56, -inf  ;;  %v830_v59 = vsel %vm829_vm13, %v827_v49, %v828_v2  ;;  %v643_v60 = vsel %vm194_vm0, %v2297_v9, -inf  ;;  %v645_v43 = vsel %vm200_vm1, %v2300_v50, -inf }
  0x90   : > { %v642_v42 = vmax.f32 %v640_v13, %v641_v41  ;;  %v1003_v47 = vmax.f32 %v1001_v55, %v1002_v61  ;;  %v831_v30 = vrot.slane %v830_v59, 4  ;;  %v470_v12 = vsel %vm469_vm2, %v2234_v58, %v2237_v29 }
  0x91   : > { %v283_v46 = vrot.slane %v282_v28, 2  ;;  %v693_v36 = vadd.f32 %v2129_v4, %v1883_v32  ;;  %vm472_vm14 = vcmp.lt.s32.totalorder %v470_v12, %v471_v62  ;;  %v2325_v16 = vsel %vm194_vm0, %v2307_v15, -inf }
  0x92   : > { %v644_v3 = vmax.f32 %v642_v42, %v643_v60  ;;  %v1004_v10 = vrot.slane %v1003_v47, 1  ;;  %vm832_vm15 = vcmp.lt.s32.totalorder %v830_v59, %v831_v30  ;;  %v473_v52 = vsel %vm472_vm14, %v470_v12, %v471_v62 }
  0x93   : > { %v284_v53 = vmax.f32 %v282_v28, %v283_v46  ;;  %v833_v44 = vsel %vm832_vm15, %v830_v59, %v831_v30  ;;  %vm475_vm2 = vcmp.lt.s32.totalorder %v473_v52, %v2261_v40  ;;  %v2330_v29 = vsel %vm194_vm0, %v2319_v31, -inf }
  0x94   : > { %v646_v58 = vmax.f32 %v644_v3, %v645_v43  ;;  %v1005_v32 = vmax.f32 %v1003_v47, %v1004_v10  ;;  %v834_v4 = vrot.slane %v833_v44, 2  ;;  %v476_v14 = vsel %vm475_vm2, %v473_v52, %v2261_v40 }
  0x95   : > { %v285_v21 = vrot.slane %v284_v53, 1  ;;  %v2338_v62 = vadd.f32 %v2250_v26, %v1925_v51  ;;  %v477_v39 = vrot.slane %v476_v14, 4  ;;  %v289_v24 = vmax.f32 %v2325_v16, %v2330_v29 }
  0x96   : > { %v647_v28 = vrot.slane %v646_v58, 4  ;;  %v1085_v20 = vadd.f32 %v1005_v32, %v693_v36  ;;  %vm835_vm4 = vcmp.lt.s32.totalorder %v833_v44, %v834_v4  ;;  %v290_v27 = vsel %vm194_vm0, %v2334_v7, -inf }
  0x97   : > { %v2340_v48 = vmax.f32 %v284_v53, %v285_v21  ;;  %v836_v22 = vsel %vm835_vm4, %v833_v44, %v834_v4  ;;  %vm478_vm6 = vcmp.lt.s32.totalorder %v476_v14, %v477_v39  ;;  %v2357_v55 = vsel %vm200_vm1, %v2343_v35, -inf }
  0x98   : > { %v648_v40 = vmax.f32 %v646_v58, %v647_v28  ;;  %v2349_v8 = vmul.f32 0.33333334, %v1085_v20  ;;  %v837_v51 = vrot.slane %v836_v22, 1  ;;  %v479_v26 = vsel %vm478_vm6, %v476_v14, %v477_v39 }
  0x99   : > { %vm332_vm7 = vcmp.eq.f32.partialorder %v1832_v17, %v2340_v48  ;;  %v480_v11 = vrot.slane %v479_v26, 2  ;;  %vm333_vm3 = vcmp.eq.f32.partialorder %v1835_v18, %v2340_v48  ;;  %vm334_vm8 = vcmp.eq.f32.partialorder %v1842_v33, %v2340_v48 }
  0x9a   : > { %v649_v2 = vrot.slane %v648_v40, 2  ;;  %v1105_v49 = vsel %vm194_vm0, %v2349_v8, -inf  ;;  %vm838_vm5 = vcmp.lt.s32.totalorder %v836_v22, %v837_v51  ;;  %v364_v61 = vsel %vm332_vm7, %v1701_v1, 27 }
  0x9b   : > { %1106 = vmax.xlane.f32.xlu0 %v1105_v49  ;;  %v839_v17 = vsel %vm838_vm5, %v836_v22, %v837_v51  ;;  %vm481_vm9 = vcmp.lt.s32.totalorder %v479_v26, %v480_v11  ;;  %v365_v41 = vsel %vm333_vm3, %v1719_v5, 27  ;;  %vm335_vm14 = vcmp.eq.f32.partialorder %v1918_v37, %v2340_v48  ;;  %v1640_v49 = vld [vmem:[%s1707_s13 + $0xb0] sm:$0xff] }
  0x9c   : > { %v650_v13 = vmax.f32 %v648_v40, %v649_v2  ;;  %vm928_vm10 = vcmp.eq.s32.totalorder %v1701_v1, %v839_v17  ;;  %vm929_vm11 = vcmp.eq.s32.totalorder %v1719_v5, %v839_v17  ;;  %vm930_vm12 = vcmp.eq.s32.totalorder %v1722_v6, %v839_v17 }
  0x9d   : > { %vm931_vm13 = vcmp.eq.s32.totalorder %v1853_v54, %v839_v17  ;;  %v960_v18 = vsel %vm928_vm10, -3.4028235e+38, %v2124_v38  ;;  %v961_v59 = vsel %vm929_vm11, -3.4028235e+38, %v2127_v0  ;;  %v962_v42 = vsel %vm930_vm12, -3.4028235e+38, %v2132_v45 }
  0x9e   : > { %v482_v60 = vsel %vm481_vm9, %v479_v26, %v480_v11  ;;  %v963_v43 = vsel %vm931_vm13, -3.4028235e+38, %v2149_v19  ;;  %v1019_v47 = vsel %vm194_vm0, %v960_v18, -inf  ;;  %v1020_v30 = vsel %vm194_vm0, %v961_v59, -inf  ;;  %v1639_v26 = vld [vmem:[%s1707_s13 + $0xa8] sm:$0xff] }
  0x9f   : > { %v1022_v12 = vsel %vm194_vm0, %v962_v42, -inf  ;;  %v1021_v46 = vmax.f32 %v1019_v47, %v1020_v30  ;;  %v651_v36 = vrot.slane %v650_v13, 1  ;;  %v483_v3 = vrot.slane %v482_v60, 1  ;;  %v1641_v17 = vld [vmem:[%s1707_s13 + $0xb8] sm:$0x7] }
  0xa0   : > { %v1024_v38 = vsel %vm200_vm1, %v963_v43, -inf  ;;  %v366_v0 = vsel %vm334_vm8, %v1722_v6, 27  ;;  %v486_v45 = vsel %vm194_vm0, %v364_v61, 2147483647  ;;  %v487_v19 = vsel %vm194_vm0, %v365_v41, 2147483647 }
  0xa1   : > { %v1023_v16 = vmax.f32 %v1021_v46, %v1022_v12  ;;  %v2385_v10 = vmax.f32 %v650_v13, %v651_v36  ;;  %vm484_vm15 = vcmp.lt.s32.totalorder %v482_v60, %v483_v3  ;;  %vm488_vm2 = vcmp.lt.s32.totalorder %v486_v45, %v487_v19 }
  0xa2   : > { %v485_v52 = vsel %vm484_vm15, %v482_v60, %v483_v3  ;;  %v367_v53 = vsel %vm335_vm14, %v1853_v54, 27  ;;  %v489_v37 = vsel %vm488_vm2, %v486_v45, %v487_v19  ;;  %v291_v44 = vmax.f32 %v289_v24, %v290_v27  ;;  %v1638_v27 = vld [vmem:[%s1707_s13 + $0xa0] sm:$0xff] }
  0xa3   : > { %v1025_v58 = vmax.f32 %v1023_v16, %v1024_v38  ;;  %vm716_vm4 = vcmp.eq.f32.partialorder %v2291_v63, %v2385_v10  ;;  %vm717_vm6 = vcmp.eq.f32.partialorder %v2294_v56, %v2385_v10  ;;  %v490_v33 = vsel %vm194_vm0, %v366_v0, 2147483647 }
  0xa4   : > { %vm718_vm7 = vcmp.eq.f32.partialorder %v2297_v9, %v2385_v10  ;;  %vm719_vm3 = vcmp.eq.f32.partialorder %v2300_v50, %v2385_v10  ;;  %v748_v29 = vsel %vm716_vm4, %v1701_v1, 27  ;;  %v749_v32 = vsel %vm717_vm6, %v1719_v5, 27 }
  0xa5   : > { %v1026_v4 = vrot.slane %v1025_v58, 4  ;;  %v750_v14 = vsel %vm718_vm7, %v1722_v6, 27  ;;  %v751_v21 = vsel %vm719_vm3, %v1853_v54, 27  ;;  %v840_v28 = vsel %vm194_vm0, %v748_v29, 2147483647 }
  0xa6   : > { %v841_v39 = vsel %vm194_vm0, %v749_v32, 2147483647  ;;  %v844_v20 = vsel %vm194_vm0, %v750_v14, 2147483647  ;;  %v847_v24 = vsel %vm200_vm1, %v751_v21, 2147483647  ;;  %vm544_vm5 = vcmp.eq.s32.totalorder %v1701_v1, %v485_v52 }
  0xa7   : > { %v1027_v22 = vmax.f32 %v1025_v58, %v1026_v4  ;;  %vm842_vm8 = vcmp.lt.s32.totalorder %v840_v28, %v841_v39  ;;  %vm545_vm9 = vcmp.eq.s32.totalorder %v1719_v5, %v485_v52  ;;  %vm546_vm10 = vcmp.eq.s32.totalorder %v1722_v6, %v485_v52 }
  0xa8   : > { %v843_v40 = vsel %vm842_vm8, %v840_v28, %v841_v39  ;;  %vm547_vm11 = vcmp.eq.s32.totalorder %v1853_v54, %v485_v52  ;;  %v2410_v51 = vsel %vm544_vm5, -3.4028235e+38, %v1638_v27  ;;  %v2413_v2 = vsel %vm545_vm9, -3.4028235e+38, %v1639_v26 }
  0xa9   : > { %v1028_v11 = vrot.slane %v1027_v22, 2  ;;  %vm845_vm12 = vcmp.lt.s32.totalorder %v843_v40, %v844_v20  ;;  %v2416_v61 = vsel %vm546_vm10, -3.4028235e+38, %v1640_v49  ;;  %v2419_v13 = vsel %vm547_vm11, -3.4028235e+38, %v1641_v17 }
  0xaa   : > { %v846_v41 = vsel %vm845_vm12, %v843_v40, %v844_v20  ;;  %v653_v18 = vsel %vm194_vm0, %v2410_v51, -inf  ;;  %v654_v59 = vsel %vm194_vm0, %v2413_v2, -inf  ;;  %v656_v42 = vsel %vm194_vm0, %v2416_v61, -inf }
  0xab   : > { %v1029_v60 = vmax.f32 %v1027_v22, %v1028_v11  ;;  %vm848_vm13 = vcmp.lt.s32.totalorder %v846_v41, %v847_v24  ;;  %v655_v43 = vmax.f32 %v653_v18, %v654_v59  ;;  %v493_v47 = vsel %vm200_vm1, %v367_v53, 2147483647 }
  0xac   : > { %v849_v30 = vsel %vm848_vm13, %v846_v41, %v847_v24  ;;  %v658_v12 = vsel %vm200_vm1, %v2419_v13, -inf  ;;  %vm491_vm14 = vcmp.lt.s32.totalorder %v489_v37, %v490_v33  ;;  %v293_v46 = vmax.f32 %v291_v44, %v2357_v55 }
  0xad   : > { %v1030_v36 = vrot.slane %v1029_v60, 1  ;;  %v850_v3 = vrot.slane %v849_v30, 4  ;;  %v657_v38 = vmax.f32 %v655_v43, %v656_v42  ;;  %v492_v0 = vsel %vm491_vm14, %v489_v37, %v490_v33 }
  0xae   : > { %vm494_vm15 = vcmp.lt.s32.totalorder %v492_v0, %v493_v47  ;;  %v294_v45 = vrot.slane %v293_v46, 4 }
  0xaf   : > { %v1031_v19 = vmax.f32 %v1029_v60, %v1030_v36  ;;  %vm851_vm2 = vcmp.lt.s32.totalorder %v849_v30, %v850_v3  ;;  %v659_v16 = vmax.f32 %v657_v38, %v658_v12  ;;  %v495_v52 = vsel %vm494_vm15, %v492_v0, %v493_v47  ;;  %v1642_v47 = vld [vmem:[%s1707_s13 + $0xc0] sm:$0xff]  ;;  %v1643_v12 = vld [vmem:[%s1707_s13 + $0xc8] sm:$0xff]  ;;  %v1644_v36 = vld [vmem:[%s1707_s13 + $0xd0] sm:$0xff] }
  0xb0   : > { %v852_v58 = vsel %vm851_vm2, %v849_v30, %v850_v3  ;;  %v496_v29 = vrot.slane %v495_v52, 4  ;;  %v295_v53 = vmax.f32 %v293_v46, %v294_v45  ;;  %v1645_v38 = vld [vmem:[%s1707_s13 + $0xd8] sm:$0x7] }
  0xb1   : > { %v1087_v32 = vadd.f32 %v1031_v19, %v2338_v62  ;;  %v853_v4 = vrot.slane %v852_v58, 2  ;;  %v660_v14 = vrot.slane %v659_v16, 4  ;;  %v2438_v62 = vadd.f32 %v2385_v10, %v2010_v25 }
  0xb2   : > { %vm497_vm4 = vcmp.lt.s32.totalorder %v495_v52, %v496_v29  ;;  %v296_v21 = vrot.slane %v295_v53, 2 }
  0xb3   : > { %v2432_v55 = vmul.f32 0.33333334, %v1087_v32  ;;  %vm854_vm6 = vcmp.lt.s32.totalorder %v852_v58, %v853_v4  ;;  %v661_v44 = vmax.f32 %v659_v16, %v660_v14  ;;  %v498_v37 = vsel %vm497_vm4, %v495_v52, %v496_v29 }
  0xb4   : > { %v855_v33 = vsel %vm854_vm6, %v852_v58, %v853_v4  ;;  %v499_v28 = vrot.slane %v498_v37, 2  ;;  %v297_v39 = vmax.f32 %v295_v53, %v296_v21 }
  0xb5   : > { %v1111_v20 = vsel %vm194_vm0, %v2432_v55, -inf  ;;  %v856_v24 = vrot.slane %v855_v33, 1  ;;  %v662_v22 = vrot.slane %v661_v44, 2 }
  0xb6   : > { %1112 = vmax.xlane.f32.xlu1 %v1111_v20  ;;  %vm500_vm7 = vcmp.lt.s32.totalorder %v498_v37, %v499_v28  ;;  %v298_v49 = vrot.slane %v297_v39, 1 }
  0xb7   : > { %vm857_vm3 = vcmp.lt.s32.totalorder %v855_v33, %v856_v24  ;;  %v501_v40 = vsel %vm500_vm7, %v498_v37, %v499_v28  ;;  %v663_v26 = vmax.f32 %v661_v44, %v662_v22 }
  0xb8   : > { %v858_v27 = vsel %vm857_vm3, %v855_v33, %v856_v24  ;;  %v502_v11 = vrot.slane %v501_v40, 1  ;;  %v2472_v19 = vmax.f32 %v297_v39, %v298_v49 }
  0xb9   : > { %vm932_vm5 = vcmp.eq.s32.totalorder %v1701_v1, %v858_v27  ;;  %vm933_vm8 = vcmp.eq.s32.totalorder %v1719_v5, %v858_v27  ;;  %vm934_vm9 = vcmp.eq.s32.totalorder %v1722_v6, %v858_v27  ;;  %vm935_vm10 = vcmp.eq.s32.totalorder %v1853_v54, %v858_v27 }
  0xba   : > { %v964_v17 = vsel %vm932_vm5, -3.4028235e+38, %v2291_v63  ;;  %v965_v41 = vsel %vm933_vm8, -3.4028235e+38, %v2294_v56  ;;  %v966_v25 = vsel %vm934_vm9, -3.4028235e+38, %v2297_v9  ;;  %vm503_vm11 = vcmp.lt.s32.totalorder %v501_v40, %v502_v11 }
  0xbb   : > { %v967_v10 = vsel %vm935_vm10, -3.4028235e+38, %v2300_v50  ;;  %v1032_v18 = vsel %vm194_vm0, %v964_v17, -inf  ;;  %v1033_v59 = vsel %vm194_vm0, %v965_v41, -inf  ;;  %v1035_v42 = vsel %vm194_vm0, %v966_v25, -inf }
  0xbc   : > { %v1034_v60 = vmax.f32 %v1032_v18, %v1033_v59  ;;  %v1037_v63 = vsel %vm200_vm1, %v967_v10, -inf  ;;  %v664_v43 = vrot.slane %v663_v26, 1  ;;  %v504_v56 = vsel %vm503_vm11, %v501_v40, %v502_v11 }
  0xbd   : > { %vm548_vm12 = vcmp.eq.s32.totalorder %v1701_v1, %v504_v56  ;;  %vm549_vm13 = vcmp.eq.s32.totalorder %v1719_v5, %v504_v56  ;;  %vm550_vm14 = vcmp.eq.s32.totalorder %v1722_v6, %v504_v56  ;;  %vm551_vm15 = vcmp.eq.s32.totalorder %v1853_v54, %v504_v56 }
  0xbe   : > { %v1036_v9 = vmax.f32 %v1034_v60, %v1035_v42  ;;  %v2456_v50 = vmax.f32 %v663_v26, %v664_v43  ;;  %v2459_v30 = vsel %vm548_vm12, -3.4028235e+38, %v1642_v47  ;;  %v2462_v46 = vsel %vm549_vm13, -3.4028235e+38, %v1643_v12 }
  0xbf   : > { %v2465_v3 = vsel %vm550_vm14, -3.4028235e+38, %v1644_v36  ;;  %v2468_v0 = vsel %vm551_vm15, -3.4028235e+38, %v1645_v38  ;;  %v666_v45 = vsel %vm194_vm0, %v2459_v30, -inf  ;;  %v667_v52 = vsel %vm194_vm0, %v2462_v46, -inf }
  0xc0   : > { %v1038_v16 = vmax.f32 %v1036_v9, %v1037_v63  ;;  %vm720_vm2 = vcmp.eq.f32.partialorder %v2410_v51, %v2456_v50  ;;  %vm721_vm4 = vcmp.eq.f32.partialorder %v2413_v2, %v2456_v50  ;;  %vm722_vm6 = vcmp.eq.f32.partialorder %v2416_v61, %v2456_v50 }
  0xc1   : > { %vm723_vm7 = vcmp.eq.f32.partialorder %v2419_v13, %v2456_v50  ;;  %v752_v58 = vsel %vm720_vm2, %v1701_v1, 27  ;;  %v753_v29 = vsel %vm721_vm4, %v1719_v5, 27  ;;  %v754_v32 = vsel %vm722_vm6, %v1722_v6, 27 }
  0xc2   : > { %v1039_v53 = vrot.slane %v1038_v16, 4  ;;  %v755_v4 = vsel %vm723_vm7, %v1853_v54, 27  ;;  %v859_v14 = vsel %vm194_vm0, %v752_v58, 2147483647  ;;  %v860_v21 = vsel %vm194_vm0, %v753_v29, 2147483647 }
  0xc3   : > { %v863_v44 = vsel %vm194_vm0, %v754_v32, 2147483647  ;;  %v866_v37 = vsel %vm200_vm1, %v755_v4, 2147483647  ;;  %v668_v33 = vmax.f32 %v666_v45, %v667_v52  ;;  %vm861_vm3 = vcmp.lt.s32.totalorder %v859_v14, %v860_v21 }
  0xc4   : > { %v1040_v28 = vmax.f32 %v1038_v16, %v1039_v53  ;;  %v669_v39 = vsel %vm194_vm0, %v2465_v3, -inf  ;;  %v671_v20 = vsel %vm200_vm1, %v2468_v0, -inf  ;;  %v862_v24 = vsel %vm861_vm3, %v859_v14, %v860_v21 }
  0xc5   : > { %v670_v22 = vmax.f32 %v668_v33, %v669_v39  ;;  %vm336_vm5 = vcmp.eq.f32.partialorder %v2307_v15, %v2472_v19  ;;  %vm337_vm8 = vcmp.eq.f32.partialorder %v2319_v31, %v2472_v19  ;;  %vm864_vm9 = vcmp.lt.s32.totalorder %v862_v24, %v863_v44 }
  0xc6   : > { %v1041_v40 = vrot.slane %v1040_v28, 2  ;;  %vm338_vm10 = vcmp.eq.f32.partialorder %v2334_v7, %v2472_v19  ;;  %vm339_vm11 = vcmp.eq.f32.partialorder %v2343_v35, %v2472_v19  ;;  %v865_v27 = vsel %vm864_vm9, %v862_v24, %v863_v44 }
  0xc7   : > { %v672_v26 = vmax.f32 %v670_v22, %v671_v20  ;;  %v368_v11 = vsel %vm336_vm5, %v1701_v1, 27  ;;  %v369_v49 = vsel %vm337_vm8, %v1719_v5, 27  ;;  %vm867_vm12 = vcmp.lt.s32.totalorder %v865_v27, %v866_v37 }
  0xc8   : > { %v1042_v17 = vmax.f32 %v1040_v28, %v1041_v40  ;;  %v370_v41 = vsel %vm338_vm10, %v1722_v6, 27  ;;  %v371_v25 = vsel %vm339_vm11, %v1853_v54, 27  ;;  %v868_v10 = vsel %vm867_vm12, %v865_v27, %v866_v37 }
  0xc9   : > { %v673_v18 = vrot.slane %v672_v26, 4  ;;  %v505_v59 = vsel %vm194_vm0, %v368_v11, 2147483647  ;;  %v506_v42 = vsel %vm194_vm0, %v369_v49, 2147483647  ;;  %v869_v63 = vrot.slane %v868_v10, 4 }
  0xca   : > { %v1043_v60 = vrot.slane %v1042_v17, 1  ;;  %vm507_vm13 = vcmp.lt.s32.totalorder %v505_v59, %v506_v42  ;;  %v509_v43 = vsel %vm194_vm0, %v370_v41, 2147483647  ;;  %v512_v47 = vsel %vm200_vm1, %v371_v25, 2147483647 }
  0xcb   : > { %v674_v56 = vmax.f32 %v672_v26, %v673_v18  ;;  %v508_v9 = vsel %vm507_vm13, %v505_v59, %v506_v42  ;;  %vm870_vm14 = vcmp.lt.s32.totalorder %v868_v10, %v869_v63 }
  0xcc   : > { %v1044_v12 = vmax.f32 %v1042_v17, %v1043_v60  ;;  %vm510_vm15 = vcmp.lt.s32.totalorder %v508_v9, %v509_v43  ;;  %v871_v36 = vsel %vm870_vm14, %v868_v10, %v869_v63 }
  0xcd   : > { %v675_v38 = vrot.slane %v674_v56, 2  ;;  %v511_v45 = vsel %vm510_vm15, %v508_v9, %v509_v43  ;;  %v872_v52 = vrot.slane %v871_v36, 2 }
  0xce   : > { %v1088_v16 = vadd.f32 %v1044_v12, %v2438_v62  ;;  %vm513_vm2 = vcmp.lt.s32.totalorder %v511_v45, %v512_v47 }
  0xcf   : > { %v676_v58 = vmax.f32 %v674_v56, %v675_v38  ;;  %v514_v29 = vsel %vm513_vm2, %v511_v45, %v512_v47  ;;  %vm873_vm4 = vcmp.lt.s32.totalorder %v871_v36, %v872_v52 }
  0xd0   : > { %v2513_v53 = vmul.f32 0.33333334, %v1088_v16  ;;  %v515_v32 = vrot.slane %v514_v29, 4  ;;  %v874_v4 = vsel %vm873_vm4, %v871_v36, %v872_v52 }
  0xd1   : > { %v677_v14 = vrot.slane %v676_v58, 1  ;;  %v875_v44 = vrot.slane %v874_v4, 1 }
  0xd2   : > { %v1114_v21 = vsel %vm194_vm0, %v2513_v53, -inf  ;;  %vm516_vm6 = vcmp.lt.s32.totalorder %v514_v29, %v515_v32 }
  0xd3   : > { %1115 = vmax.xlane.f32.xlu0 %v1114_v21  ;;  %v678_v37 = vmax.f32 %v676_v58, %v677_v14  ;;  %v517_v33 = vsel %vm516_vm6, %v514_v29, %v515_v32  ;;  %vm876_vm7 = vcmp.lt.s32.totalorder %v874_v4, %v875_v44 }
  0xd4   : > { %v518_v62 = vrot.slane %v517_v33, 2  ;;  %v877_v28 = vsel %vm876_vm7, %v874_v4, %v875_v44 }
  0xd5   : > { %v2518_v39 = vadd.f32 %v678_v37, %v2340_v48  ;;  %vm724_vm3 = vcmp.eq.f32.partialorder %v2459_v30, %v678_v37  ;;  %vm725_vm5 = vcmp.eq.f32.partialorder %v2462_v46, %v678_v37  ;;  %vm936_vm8 = vcmp.eq.s32.totalorder %v1701_v1, %v877_v28 }
  0xd6   : > { %vm937_vm9 = vcmp.eq.s32.totalorder %v1719_v5, %v877_v28  ;;  %vm938_vm10 = vcmp.eq.s32.totalorder %v1722_v6, %v877_v28  ;;  %vm939_vm11 = vcmp.eq.s32.totalorder %v1853_v54, %v877_v28  ;;  %v968_v20 = vsel %vm936_vm8, -3.4028235e+38, %v2410_v51 }
  0xd7   : > { %v969_v24 = vsel %vm937_vm9, -3.4028235e+38, %v2413_v2  ;;  %v970_v22 = vsel %vm938_vm10, -3.4028235e+38, %v2416_v61  ;;  %vm726_vm12 = vcmp.eq.f32.partialorder %v2465_v3, %v678_v37  ;;  %v971_v48 = vsel %vm939_vm11, -3.4028235e+38, %v2419_v13 }
  0xd8   : > { %v1045_v40 = vsel %vm194_vm0, %v968_v20, -inf  ;;  %v1046_v27 = vsel %vm194_vm0, %v969_v24, -inf  ;;  %v1048_v26 = vsel %vm194_vm0, %v970_v22, -inf  ;;  %v1050_v49 = vsel %vm200_vm1, %v971_v48, -inf }
  0xd9   : > { %v1047_v11 = vmax.f32 %v1045_v40, %v1046_v27  ;;  %vm727_vm13 = vcmp.eq.f32.partialorder %v2468_v0, %v678_v37  ;;  %v756_v51 = vsel %vm724_vm3, %v1701_v1, 27  ;;  %v757_v2 = vsel %vm725_vm5, %v1719_v5, 27 }
  0xda   : > { %v758_v61 = vsel %vm726_vm12, %v1722_v6, 27  ;;  %v759_v13 = vsel %vm727_vm13, %v1853_v54, 27  ;;  %v878_v17 = vsel %vm194_vm0, %v756_v51, 2147483647  ;;  %v879_v25 = vsel %vm194_vm0, %v757_v2, 2147483647 }
  0xdb   : > { %v1049_v41 = vmax.f32 %v1047_v11, %v1048_v26  ;;  %v882_v10 = vsel %vm194_vm0, %v758_v61, 2147483647  ;;  %vm880_vm14 = vcmp.lt.s32.totalorder %v878_v17, %v879_v25  ;;  %vm519_vm15 = vcmp.lt.s32.totalorder %v517_v33, %v518_v62 }
  0xdc   : > { %v881_v59 = vsel %vm880_vm14, %v878_v17, %v879_v25  ;;  %v885_v42 = vsel %vm200_vm1, %v759_v13, 2147483647  ;;  %v520_v60 = vsel %vm519_vm15, %v517_v33, %v518_v62 }
  0xdd   : > { %v1051_v18 = vmax.f32 %v1049_v41, %v1050_v49  ;;  %vm883_vm2 = vcmp.lt.s32.totalorder %v881_v59, %v882_v10  ;;  %v521_v63 = vrot.slane %v520_v60, 1 }
  0xde   : > { %v884_v56 = vsel %vm883_vm2, %v881_v59, %v882_v10 }
  0xdf   : > { %v1052_v43 = vrot.slane %v1051_v18, 4  ;;  %vm886_vm4 = vcmp.lt.s32.totalorder %v884_v56, %v885_v42  ;;  %vm522_vm6 = vcmp.lt.s32.totalorder %v520_v60, %v521_v63 }
  0xe0   : > { %v887_v47 = vsel %vm886_vm4, %v884_v56, %v885_v42  ;;  %v523_v12 = vsel %vm522_vm6, %v520_v60, %v521_v63 }
  0xe1   : > { %v1053_v9 = vmax.f32 %v1051_v18, %v1052_v43  ;;  %v888_v36 = vrot.slane %v887_v47, 4  ;;  %vm552_vm7 = vcmp.eq.s32.totalorder %v1701_v1, %v523_v12  ;;  %vm553_vm3 = vcmp.eq.s32.totalorder %v1719_v5, %v523_v12 }
  0xe2   : > { %vm554_vm5 = vcmp.eq.s32.totalorder %v1722_v6, %v523_v12  ;;  %vm555_vm8 = vcmp.eq.s32.totalorder %v1853_v54, %v523_v12  ;;  %v2553_v45 = vsel %vm552_vm7, -3.4028235e+38, %v2307_v15  ;;  %v2556_v16 = vsel %vm553_vm3, -3.4028235e+38, %v2319_v31 }
  0xe3   : > { %v1054_v38 = vrot.slane %v1053_v9, 2  ;;  %vm889_vm9 = vcmp.lt.s32.totalorder %v887_v47, %v888_v36  ;;  %v2559_v52 = vsel %vm554_vm5, -3.4028235e+38, %v2334_v7  ;;  %v2562_v58 = vsel %vm555_vm8, -3.4028235e+38, %v2343_v35 }
  0xe4   : > { %v679_v29 = vsel %vm194_vm0, %v2553_v45, -inf  ;;  %v890_v4 = vsel %vm889_vm9, %v887_v47, %v888_v36  ;;  %v680_v14 = vsel %vm194_vm0, %v2556_v16, -inf  ;;  %v682_v15 = vsel %vm194_vm0, %v2559_v52, -inf }
  0xe5   : > { %v1055_v32 = vmax.f32 %v1053_v9, %v1054_v38  ;;  %v891_v31 = vrot.slane %v890_v4, 2  ;;  %v681_v21 = vmax.f32 %v679_v29, %v680_v14  ;;  %v697_v7 = vadd.f32 %v2456_v50, %v2201_v34 }
  0xe6   : > { %v684_v35 = vsel %vm200_vm1, %v2562_v58, -inf }
  0xe7   : > { %v1056_v44 = vrot.slane %v1055_v32, 1  ;;  %vm892_vm10 = vcmp.lt.s32.totalorder %v890_v4, %v891_v31  ;;  %v683_v37 = vmax.f32 %v681_v21, %v682_v15 }
  0xe8   : > { %v893_v62 = vsel %vm892_vm10, %v890_v4, %v891_v31 }
  0xe9   : > { %v1057_v33 = vmax.f32 %v1055_v32, %v1056_v44  ;;  %v894_v28 = vrot.slane %v893_v62, 1  ;;  %v685_v20 = vmax.f32 %v683_v37, %v684_v35  ;;  %v2882_v37 = vlaneseq }
  0xeb   : > { %v1089_v24 = vadd.f32 %v1057_v33, %v697_v7  ;;  %vm895_vm11 = vcmp.lt.s32.totalorder %v893_v62, %v894_v28  ;;  %v686_v22 = vrot.slane %v685_v20, 4  ;;  %v2611_v33 = vand.u32 127, %v2882_v37 }
  0xec   : > { %v896_v40 = vsel %vm895_vm11, %v893_v62, %v894_v28 }
  0xed   : > { %v2574_v48 = vmul.f32 0.33333334, %v1089_v24  ;;  %vm940_vm12 = vcmp.eq.s32.totalorder %v1701_v1, %v896_v40  ;;  %vm941_vm13 = vcmp.eq.s32.totalorder %v1719_v5, %v896_v40  ;;  %vm942_vm14 = vcmp.eq.s32.totalorder %v1722_v6, %v896_v40 }
  0xee   : > { %vm943_vm15 = vcmp.eq.s32.totalorder %v1853_v54, %v896_v40  ;;  %v972_v50 = vsel %vm940_vm12, -3.4028235e+38, %v2459_v30  ;;  %v973_v27 = vsel %vm941_vm13, -3.4028235e+38, %v2462_v46  ;;  %v687_v26 = vmax.f32 %v685_v20, %v686_v22 }
  0xef   : > { %v1117_v34 = vsel %vm194_vm0, %v2574_v48, -inf  ;;  %v974_v11 = vsel %vm942_vm14, -3.4028235e+38, %v2465_v3  ;;  %v975_v49 = vsel %vm943_vm15, -3.4028235e+38, %v2468_v0  ;;  %v1058_v51 = vsel %vm194_vm0, %v972_v50, -inf }
  0xf0   : > { %1118 = vmax.xlane.f32.xlu1 %v1117_v34  ;;  %v1059_v2 = vsel %vm194_vm0, %v973_v27, -inf  ;;  %v1061_v13 = vsel %vm194_vm0, %v974_v11, -inf  ;;  %v688_v17 = vrot.slane %v687_v26, 2  ;;  %v1063_v41 = vsel %vm200_vm1, %v975_v49, -inf }
  0xf1   : > { %v1060_v61 = vmax.f32 %v1058_v51, %v1059_v2 }
  0xf2   : > { %v689_v30 = vmax.f32 %v687_v26, %v688_v17 }
  0xf3   : > { %v1062_v25 = vmax.f32 %v1060_v61, %v1061_v13 }
  0xf4   : > { %v690_v46 = vrot.slane %v689_v30, 1 }
  0xf5   : > { %v1064_v10 = vmax.f32 %v1062_v25, %v1063_v41 }
  0xf6   : > { %v691_v59 = vmax.f32 %v689_v30, %v690_v46 }
  0xf7   : > { %v1065_v18 = vrot.slane %v1064_v10, 4 }
  0xf8   : > { %v2591_v3 = vadd.f32 %v691_v59, %v2472_v19  ;;  %vm728_vm2 = vcmp.eq.f32.partialorder %v2553_v45, %v691_v59  ;;  %vm729_vm4 = vcmp.eq.f32.partialorder %v2556_v16, %v691_v59  ;;  %vm730_vm6 = vcmp.eq.f32.partialorder %v2559_v52, %v691_v59 }
  0xf9   : > { %v1066_v42 = vmax.f32 %v1064_v10, %v1065_v18  ;;  %vm731_vm7 = vcmp.eq.f32.partialorder %v2562_v58, %v691_v59  ;;  %v760_v0 = vsel %vm728_vm2, %v1701_v1, 27  ;;  %v761_v60 = vsel %vm729_vm4, %v1719_v5, 27 }
  0xfa   : > { %v762_v43 = vsel %vm730_vm6, %v1722_v6, 27  ;;  %v763_v56 = vsel %vm731_vm7, %v1853_v54, 27  ;;  %v897_v19 = vsel %vm194_vm0, %v760_v0, 2147483647  ;;  %v898_v9 = vsel %vm194_vm0, %v761_v60, 2147483647 }
  0xfb   : > { %v1067_v63 = vrot.slane %v1066_v42, 2  ;;  %v901_v47 = vsel %vm194_vm0, %v762_v43, 2147483647  ;;  %vm899_vm3 = vcmp.lt.s32.totalorder %v897_v19, %v898_v9  ;;  %v904_v38 = vsel %vm200_vm1, %v763_v56, 2147483647 }
  0xfc   : > { %v900_v36 = vsel %vm899_vm3, %v897_v19, %v898_v9 }
  0xfd   : > { %v1068_v12 = vmax.f32 %v1066_v42, %v1067_v63  ;;  %vm902_vm5 = vcmp.lt.s32.totalorder %v900_v36, %v901_v47 }
  0xfe   : > { %v903_v32 = vsel %vm902_vm5, %v900_v36, %v901_v47 }
  0xff   : > { %v1069_v29 = vrot.slane %v1068_v12, 1  ;;  %vm905_vm8 = vcmp.lt.s32.totalorder %v903_v32, %v904_v38 }
 0x100   : > { %v906_v14 = vsel %vm905_vm8, %v903_v32, %v904_v38 }
 0x101   : > { %v1070_v4 = vmax.f32 %v1068_v12, %v1069_v29  ;;  %v907_v31 = vrot.slane %v906_v14, 4 }
 0x103   : > { %v1090_v15 = vadd.f32 %v1070_v4, %v2518_v39  ;;  %vm908_vm9 = vcmp.lt.s32.totalorder %v906_v14, %v907_v31 }
 0x104   : > { %v909_v7 = vsel %vm908_vm9, %v906_v14, %v907_v31 }
 0x105   : > { %v2606_v21 = vmul.f32 0.33333334, %v1090_v15  ;;  %v910_v35 = vrot.slane %v909_v7, 2 }
 0x107   : > { %v1120_v44 = vsel %vm194_vm0, %v2606_v21, -inf  ;;  %vm911_vm10 = vcmp.lt.s32.totalorder %v909_v7, %v910_v35 }
 0x108   : > { %1121 = vmax.xlane.f32.xlu0 %v1120_v44  ;;  %v912_v62 = vsel %vm911_vm10, %v909_v7, %v910_v35 }
 0x109   : > { %v913_v28 = vrot.slane %v912_v62, 1 }
 0x10b   : > { %v2613_v20 = vpop.xlane.xlu0 %1103  ;;  %vm914_vm12 = vcmp.lt.s32.totalorder %v912_v62, %v913_v28 }
 0x10c   : > { %vm1134_vm11 = vcmp.eq.f32.partialorder %v2212_v23, %v2613_v20  ;;  %v915_v24 = vsel %vm914_vm12, %v912_v62, %v913_v28 }
 0x10d   : > { %v1142_v39 = vsel %vm1134_vm11, %v2611_v33, 8  ;;  %vm944_vm13 = vcmp.eq.s32.totalorder %v1701_v1, %v915_v24  ;;  %vm945_vm14 = vcmp.eq.s32.totalorder %v1719_v5, %v915_v24  ;;  %vm946_vm15 = vcmp.eq.s32.totalorder %v1722_v6, %v915_v24 }
 0x10e   : > { %v2619_v22 = vsel %vm194_vm0, %v1142_v39, 2147483647  ;;  %vm947_vm2 = vcmp.eq.s32.totalorder %v1853_v54, %v915_v24  ;;  %v976_v40 = vsel %vm944_vm13, -3.4028235e+38, %v2553_v45  ;;  %v977_v34 = vsel %vm945_vm14, -3.4028235e+38, %v2556_v16 }
 0x10f   : > { %v978_v50 = vsel %vm946_vm15, -3.4028235e+38, %v2559_v52  ;;  %v979_v27 = vsel %vm947_vm2, -3.4028235e+38, %v2562_v58  ;;  %v1071_v26 = vsel %vm194_vm0, %v976_v40, -inf  ;;  %v1072_v11 = vsel %vm194_vm0, %v977_v34, -inf }
 0x110   : > { %v1074_v1 = vsel %vm194_vm0, %v978_v50, -inf  ;;  %v1073_v49 = vmax.f32 %v1071_v26, %v1072_v11  ;;  %v1152_v5 = vshra.s32 %v2619_v22, 16  ;;  %v1076_v6 = vsel %vm200_vm1, %v979_v27, -inf }
 0x111   : > { %v1151_v39 = vand.u32 65535, %v2619_v22 }
 0x112   : > { %v1075_v54 = vmax.f32 %v1073_v49, %v1074_v1  ;;  %v1154_v51 = vcvt.s32.f32 %v1152_v5 }
 0x113   : > { %v1153_v40 = vcvt.s32.f32 %v1151_v39 }
 0x114   : > { %v1077_v45 = vmax.f32 %v1075_v54, %v1076_v6  ;;  %1155 = vmin.xlane.f32.xlu0 %v1154_v51 }
 0x116   : > { %v1078_v16 = vrot.slane %v1077_v45, 4 }
 0x117   : > { %v2634_v2 = vpop.xlane.xlu1 %1109 }
 0x118   : > { %vm1136_vm4 = vcmp.eq.f32.partialorder %v2263_v57, %v2634_v2  ;;  %v1079_v61 = vmax.f32 %v1077_v45, %v1078_v16 }
 0x119   : > { %v1144_v52 = vsel %vm1136_vm4, %v2611_v33, 8 }
 0x11a   : > { %v1180_v58 = vsel %vm194_vm0, %v1144_v52, 2147483647  ;;  %v1080_v17 = vrot.slane %v1079_v61, 2 }
 0x11b   : > { %v1182_v13 = vshra.s32 %v1180_v58, 16  ;;  %v1181_v50 = vand.u32 65535, %v1180_v58 }
 0x11c   : > { %v1081_v25 = vmax.f32 %v1079_v61, %v1080_v17 }
 0x11d   : > { %v1184_v41 = vcvt.s32.f32 %v1182_v13  ;;  %v1183_v26 = vcvt.s32.f32 %v1181_v50 }
 0x11e   : > { %v1082_v30 = vrot.slane %v1081_v25, 1 }
 0x11f   : > { %1185 = vmin.xlane.f32.xlu0 %v1184_v41 }
 0x120   : > { %v1083_v10 = vmax.f32 %v1081_v25, %v1082_v30 }
 0x122   : > { %v1091_v46 = vadd.f32 %v1083_v10, %v2591_v3 }
 0x124   : > { %v2641_v18 = vmul.f32 0.33333334, %v1091_v46 }
 0x126   : > { %v1123_v59 = vsel %vm194_vm0, %v2641_v18, -inf }
 0x127   : > { %1124 = vmax.xlane.f32.xlu1 %v1123_v59 }
 0x128   : > { %v2645_v42 = vpop.xlane.xlu0 %1106 }
 0x129   : > { %vm1135_vm1 = vcmp.eq.f32.partialorder %v2349_v8, %v2645_v42 }
 0x12a   : > { %v1143_v0 = vsel %vm1135_vm1, %v2611_v33, 8 }
 0x12b   : > { %v1165_v60 = vsel %vm194_vm0, %v1143_v0, 2147483647 }
 0x12c   : > { %v1167_v63 = vshra.s32 %v1165_v60, 16  ;;  %v1166_v5 = vand.u32 65535, %v1165_v60 }
 0x12e   : > { %v1169_v43 = vcvt.s32.f32 %v1167_v63  ;;  %v1168_v45 = vcvt.s32.f32 %v1166_v5 }
 0x130   : > { %1170 = vmin.xlane.f32.xlu1 %v1169_v43 }
 0x143   : > { %v2651_v56 = vpop.xlane.xlu1 %1112 }
 0x144   : > { %vm1137_vm6 = vcmp.eq.f32.partialorder %v2432_v55, %v2651_v56 }
 0x145   : > { %v1145_v3 = vsel %vm1137_vm6, %v2611_v33, 8 }
 0x146   : > { %v1195_v19 = vsel %vm194_vm0, %v1145_v3, 2147483647 }
 0x147   : > { %v1197_v9 = vshra.s32 %v1195_v19, 16  ;;  %v1196_v52 = vand.u32 65535, %v1195_v19 }
 0x149   : > { %v1199_v47 = vcvt.s32.f32 %v1197_v9  ;;  %v1198_v61 = vcvt.s32.f32 %v1196_v52 }
 0x14b   : > { %1200 = vmin.xlane.f32.xlu1 %v1199_v47 }
 0x160   : > { %v2657_v12 = vpop.xlane.xlu0 %1115 }
 0x161   : > { %vm1138_vm7 = vcmp.eq.f32.partialorder %v2513_v53, %v2657_v12 }
 0x162   : > { %v1146_v36 = vsel %vm1138_vm7, %v2611_v33, 8 }
 0x163   : > { %v1210_v38 = vsel %vm194_vm0, %v1146_v36, 2147483647 }
 0x164   : > { %v1212_v29 = vshra.s32 %v1210_v38, 16  ;;  %v1211_v17 = vand.u32 65535, %v1210_v38 }
 0x166   : > { %v1214_v32 = vcvt.s32.f32 %v1212_v29  ;;  %v1213_v25 = vcvt.s32.f32 %v1211_v17 }
 0x168   : > { %1215 = vmin.xlane.f32.xlu0 %v1214_v32 }
 0x17d   : > { %v2663_v4 = vpop.xlane.xlu1 %1118 }
 0x17e   : > { %vm1139_vm3 = vcmp.eq.f32.partialorder %v2574_v48, %v2663_v4 }
 0x17f   : > { %v1147_v14 = vsel %vm1139_vm3, %v2611_v33, 8 }
 0x180   : > { %v1225_v15 = vsel %vm194_vm0, %v1147_v14, 2147483647 }
 0x181   : > { %v1227_v31 = vshra.s32 %v1225_v15, 16  ;;  %v1226_v10 = vand.u32 65535, %v1225_v15 }
 0x183   : > { %v1229_v7 = vcvt.s32.f32 %v1227_v31  ;;  %v1228_v59 = vcvt.s32.f32 %v1226_v10 }
 0x185   : > { %1230 = vmin.xlane.f32.xlu1 %v1229_v7 }
 0x195   : > { %v2669_v44 = vpop.xlane.xlu0 %1121 }
 0x196   : > { %vm1140_vm5 = vcmp.eq.f32.partialorder %v2606_v21, %v2669_v44 }
 0x197   : > { %v1148_v35 = vsel %vm1140_vm5, %v2611_v33, 8 }
 0x198   : > { %v1240_v37 = vsel %vm194_vm0, %v1148_v35, 2147483647 }
 0x199   : > { %v1242_v62 = vshra.s32 %v1240_v37, 16  ;;  %v1241_v60 = vand.u32 65535, %v1240_v37 }
 0x19b   : > { %v1244_v28 = vcvt.s32.f32 %v1242_v62 }
 0x19d   : > { %1245 = vmin.xlane.f32.xlu0 %v1244_v28 }
 0x1a1   : > { %v1156_v24 = vpop.xlane.xlu0 %1155 }
 0x1a2   : > { %vm1157_vm8 = vcmp.eq.f32.partialorder %v1154_v51, %v1156_v24  ;;  %v1162_v19 = vcvt.f32.s32 %v1156_v24 }
 0x1a3   : > { %v1158_v34 = vsel %vm1157_vm8, %v1153_v40, inf }
 0x1a4   : > { %1159 = vmin.xlane.f32.xlu0 %v1158_v34 }
 0x1ac   : > { %v1186_v27 = vpop.xlane.xlu0 %1185 }
 0x1ad   : > { %vm1187_vm9 = vcmp.eq.f32.partialorder %v1184_v41, %v1186_v27  ;;  %v1192_v29 = vcvt.f32.s32 %v1186_v27 }
 0x1ae   : > { %v1188_v11 = vsel %vm1187_vm9, %v1183_v26, inf }
 0x1af   : > { %1189 = vmin.xlane.f32.xlu0 %v1188_v11  ;;  %v1193_v31 = vshll.u32 %v1192_v29, 16 }
 0x1b4   : > { %v2676_v1 = vpop.xlane.xlu1 %1124 }
 0x1b5   : > { %vm1141_vm10 = vcmp.eq.f32.partialorder %v2641_v18, %v2676_v1 }
 0x1b6   : > { %v1149_v49 = vsel %vm1141_vm10, %v2611_v33, 8 }
 0x1b7   : > { %v1255_v22 = vsel %vm194_vm0, %v1149_v49, 2147483647 }
 0x1b8   : > { %v1257_v6 = vshra.s32 %v1255_v22, 16 }
 0x1ba   : > { %v1259_v54 = vcvt.s32.f32 %v1257_v6 }
 0x1bc   : > { %1260 = vmin.xlane.f32.xlu1 %v1259_v54 }
 0x1bd   : > { %v1171_v51 = vpop.xlane.xlu1 %1170 }
 0x1be   : > { %vm1172_vm11 = vcmp.eq.f32.partialorder %v1169_v43, %v1171_v51  ;;  %v1243_v43 = vcvt.s32.f32 %v1241_v60  ;;  %v1177_v24 = vcvt.f32.s32 %v1171_v51 }
 0x1bf   : > { %v1173_v16 = vsel %vm1172_vm11, %v1168_v45, inf }
 0x1c0   : > { %1174 = vmin.xlane.f32.xlu1 %v1173_v16  ;;  %v1178_v50 = vshll.u32 %v1177_v24, 16 }
 0x1d8   : > { %v1201_v58 = vpop.xlane.xlu1 %1200 }
 0x1d9   : > { %vm1202_vm12 = vcmp.eq.f32.partialorder %v1199_v47, %v1201_v58  ;;  %v1163_v47 = vshll.u32 %v1162_v19, 16  ;;  %v1207_v49 = vcvt.f32.s32 %v1201_v58 }
 0x1da   : > { %v1203_v13 = vsel %vm1202_vm12, %v1198_v61, inf }
 0x1db   : > { %1204 = vmin.xlane.f32.xlu1 %v1203_v13  ;;  %v1208_v5 = vshll.u32 %v1207_v49, 16 }
 0x1f5   : > { %v1216_v41 = vpop.xlane.xlu0 %1215 }
 0x1f6   : > { %vm1217_vm13 = vcmp.eq.f32.partialorder %v1214_v32, %v1216_v41 }
 0x1f7   : > { %v1218_v30 = vsel %vm1217_vm13, %v1213_v25, inf }
 0x1f8   : > { %1219 = vmin.xlane.f32.xlu0 %v1218_v30 }
 0x212   : > { %v2682_v46 = vpop.xlane.xlu1 %1230 }
 0x213   : > { %vm1232_vm14 = vcmp.eq.f32.partialorder %v1229_v7, %v2682_v46 }
 0x214   : > { %v1233_v0 = vsel %vm1232_vm14, %v1228_v59, inf }
 0x215   : > { %1234 = vmin.xlane.f32.xlu1 %v1233_v0 }
 0x22a   : > { %v2685_v63 = vpop.xlane.xlu0 %1245 }
 0x22b   : > { %vm1247_vm15 = vcmp.eq.f32.partialorder %v1244_v28, %v2685_v63  ;;  %v1256_v28 = vand.u32 65535, %v1255_v22 }
 0x22c   : > { %v1248_v3 = vsel %vm1247_vm15, %v1243_v43, inf }
 0x22d   : > { %1249 = vmin.xlane.f32.xlu0 %v1248_v3  ;;  %v1258_v39 = vcvt.s32.f32 %v1256_v28 }
 0x231   : > { %v1160_v9 = vpop.xlane.xlu0 %1159 }
 0x232   : > { %v1161_v36 = vcvt.f32.s32 %v1160_v9 }
 0x234   : > { %v1164_v38 = vadd.s32 %v1163_v47, %v1161_v36 }
 0x236   : > { %vm1270_vm2 = vcmp.eq.s32.totalorder %v2611_v33, %v1164_v38 }
 0x237   : > { %v2690_v32 = vsel %vm1270_vm2, -3.4028235e+38, %v2212_v23 }
 0x238   : > { %v1286_v14 = vsel %vm194_vm0, %v2690_v32, -inf }
 0x239   : > { %1287 = vmax.xlane.f32.xlu0 %v1286_v14 }
 0x23c   : > { %v1190_v15 = vpop.xlane.xlu0 %1189 }
 0x23d   : > { %v1191_v7 = vcvt.f32.s32 %v1190_v15 }
 0x23f   : > { %v1194_v35 = vadd.s32 %v1193_v31, %v1191_v7 }
 0x241   : > { %vm1272_vm4 = vcmp.eq.s32.totalorder %v2611_v33, %v1194_v35 }
 0x242   : > { %v2696_v37 = vsel %vm1272_vm4, -3.4028235e+38, %v2263_v57 }
 0x243   : > { %v1292_v62 = vsel %vm194_vm0, %v2696_v37, -inf }
 0x244   : > { %1293 = vmax.xlane.f32.xlu0 %v1292_v62 }
 0x249   : > { %v2700_v23 = vpop.xlane.xlu1 %1260 }
 0x24a   : > { %vm1262_vm1 = vcmp.eq.f32.partialorder %v1259_v54, %v2700_v23  ;;  %v1267_v7 = vcvt.f32.s32 %v2700_v23 }
 0x24b   : > { %v1263_v40 = vsel %vm1262_vm1, %v1258_v39, inf }
 0x24c   : > { %1264 = vmin.xlane.f32.xlu1 %v1263_v40  ;;  %v1268_v62 = vshll.u32 %v1267_v7, 16 }
 0x24d   : > { %v1175_v34 = vpop.xlane.xlu1 %1174 }
 0x24e   : > { %v1176_v27 = vcvt.f32.s32 %v1175_v34 }
 0x250   : > { %v1179_v26 = vadd.s32 %v1178_v50, %v1176_v27 }
 0x252   : > { %vm1271_vm6 = vcmp.eq.s32.totalorder %v2611_v33, %v1179_v26 }
 0x253   : > { %v2705_v57 = vsel %vm1271_vm6, -3.4028235e+38, %v2349_v8  ;;  %v1222_v8 = vcvt.f32.s32 %v1216_v41 }
 0x254   : > { %v1289_v11 = vsel %vm194_vm0, %v2705_v57, -inf }
 0x255   : > { %1290 = vmax.xlane.f32.xlu1 %v1289_v11  ;;  %v1223_v52 = vshll.u32 %v1222_v8, 16 }
 0x268   : > { %v1205_v22 = vpop.xlane.xlu1 %1204 }
 0x269   : > { %v1206_v6 = vcvt.f32.s32 %v1205_v22 }
 0x26b   : > { %v1209_v54 = vadd.s32 %v1208_v5, %v1206_v6 }
 0x26d   : > { %vm1273_vm7 = vcmp.eq.s32.totalorder %v2611_v33, %v1209_v54 }
 0x26e   : > { %v2711_v51 = vsel %vm1273_vm7, -3.4028235e+38, %v2432_v55  ;;  %v1237_v55 = vcvt.f32.s32 %v2682_v46 }
 0x26f   : > { %v1295_v45 = vsel %vm194_vm0, %v2711_v51, -inf }
 0x270   : > { %1296 = vmax.xlane.f32.xlu1 %v1295_v45  ;;  %v1238_v30 = vshll.u32 %v1237_v55, 16 }
 0x285   : > { %v1220_v16 = vpop.xlane.xlu0 %1219 }
 0x286   : > { %v1221_v61 = vcvt.f32.s32 %v1220_v16 }
 0x288   : > { %v1224_v13 = vadd.s32 %v1223_v52, %v1221_v61 }
 0x28a   : > { %vm1274_vm3 = vcmp.eq.s32.totalorder %v2611_v33, %v1224_v13 }
 0x28b   : > { %v2717_v58 = vsel %vm1274_vm3, -3.4028235e+38, %v2513_v53  ;;  %v1252_v53 = vcvt.f32.s32 %v2685_v63 }
 0x28c   : > { %v1298_v17 = vsel %vm194_vm0, %v2717_v58, -inf }
 0x28d   : > { %1299 = vmax.xlane.f32.xlu0 %v1298_v17  ;;  %v1253_v43 = vshll.u32 %v1252_v53, 16 }
 0x2a2   : > { %v1235_v25 = vpop.xlane.xlu1 %1234 }
 0x2a3   : > { %v1236_v10 = vcvt.f32.s32 %v1235_v25 }
 0x2a5   : > { %v1239_v59 = vadd.s32 %v1238_v30, %v1236_v10 }
 0x2a7   : > { %vm1275_vm5 = vcmp.eq.s32.totalorder %v2611_v33, %v1239_v59 }
 0x2a8   : > { %v2724_v41 = vsel %vm1275_vm5, -3.4028235e+38, %v2574_v48 }
 0x2a9   : > { %v1301_v0 = vsel %vm194_vm0, %v2724_v41, -inf }
 0x2aa   : > { %1302 = vmax.xlane.f32.xlu1 %v1301_v0 }
 0x2ba   : > { %v1250_v60 = vpop.xlane.xlu0 %1249 }
 0x2bb   : > { %v1251_v3 = vcvt.f32.s32 %v1250_v60 }
 0x2bd   : > { %v1254_v19 = vadd.s32 %v1253_v43, %v1251_v3 }
 0x2bf   : > { %vm1276_vm8 = vcmp.eq.s32.totalorder %v2611_v33, %v1254_v19 }
 0x2c0   : > { %v2731_v46 = vsel %vm1276_vm8, -3.4028235e+38, %v2606_v21 }
 0x2c1   : > { %v1304_v9 = vsel %vm194_vm0, %v2731_v46, -inf }
 0x2c2   : > { %1305 = vmax.xlane.f32.xlu0 %v1304_v9 }
 0x2c6   : > { %v2735_v48 = vpop.xlane.xlu0 %1287 }
 0x2c7   : > { %vm1318_vm9 = vcmp.eq.f32.partialorder %v2690_v32, %v2735_v48 }
 0x2c8   : > { %v1326_v63 = vsel %vm1318_vm9, %v2611_v33, 8 }
 0x2c9   : > { %v1334_v47 = vsel %vm194_vm0, %v1326_v63, 2147483647 }
 0x2ca   : > { %v1336_v36 = vshra.s32 %v1334_v47, 16  ;;  %v1335_v53 = vand.u32 65535, %v1334_v47 }
 0x2cc   : > { %v1338_v38 = vcvt.s32.f32 %v1336_v36  ;;  %v1337_v43 = vcvt.s32.f32 %v1335_v53 }
 0x2ce   : > { %1339 = vmin.xlane.f32.xlu0 %v1338_v38 }
 0x2d1   : > { %v2741_v29 = vpop.xlane.xlu0 %1293 }
 0x2d2   : > { %vm1320_vm10 = vcmp.eq.f32.partialorder %v2696_v37, %v2741_v29 }
 0x2d3   : > { %v1328_v21 = vsel %vm1320_vm10, %v2611_v33, 8 }
 0x2d4   : > { %v1364_v14 = vsel %vm194_vm0, %v1328_v21, 2147483647 }
 0x2d5   : > { %v1366_v15 = vshra.s32 %v1364_v14, 16  ;;  %v1365_v19 = vand.u32 65535, %v1364_v14 }
 0x2d7   : > { %v1368_v31 = vcvt.s32.f32 %v1366_v15  ;;  %v1367_v63 = vcvt.s32.f32 %v1365_v19 }
 0x2d9   : > { %1369 = vmin.xlane.f32.xlu0 %v1368_v31  ;;  %v1265_v35 = vpop.xlane.xlu1 %1264 }
 0x2da   : > { %v1266_v28 = vcvt.f32.s32 %v1265_v35 }
 0x2dc   : > { %v1269_v39 = vadd.s32 %v1268_v62, %v1266_v28 }
 0x2de   : > { %vm1277_vm11 = vcmp.eq.s32.totalorder %v2611_v33, %v1269_v39 }
 0x2df   : > { %v2750_v24 = vsel %vm1277_vm11, -3.4028235e+38, %v2641_v18 }
 0x2e0   : > { %v1307_v40 = vsel %vm194_vm0, %v2750_v24, -inf }
 0x2e1   : > { %1308 = vmax.xlane.f32.xlu1 %v1307_v40 }
 0x2e2   : > { %v2754_v34 = vpop.xlane.xlu1 %1290 }
 0x2e3   : > { %vm1319_vm12 = vcmp.eq.f32.partialorder %v2705_v57, %v2754_v34 }
 0x2e4   : > { %v1327_v23 = vsel %vm1319_vm12, %v2611_v33, 8 }
 0x2e5   : > { %v1349_v50 = vsel %vm194_vm0, %v1327_v23, 2147483647 }
 0x2e6   : > { %v1351_v27 = vshra.s32 %v1349_v50, 16  ;;  %v1350_v35 = vand.u32 65535, %v1349_v50 }
 0x2e8   : > { %v1353_v26 = vcvt.s32.f32 %v1351_v27  ;;  %v1352_v14 = vcvt.s32.f32 %v1350_v35 }
 0x2ea   : > { %1354 = vmin.xlane.f32.xlu1 %v1353_v26 }
 0x2fd   : > { %v2760_v11 = vpop.xlane.xlu1 %1296 }
 0x2fe   : > { %vm1321_vm13 = vcmp.eq.f32.partialorder %v2711_v51, %v2760_v11 }
 0x2ff   : > { %v1329_v18 = vsel %vm1321_vm13, %v2611_v33, 8 }
 0x300   : > { %v1379_v49 = vsel %vm194_vm0, %v1329_v18, 2147483647 }
 0x301   : > { %v1381_v22 = vshra.s32 %v1379_v49, 16 }
 0x303   : > { %v1383_v5 = vcvt.s32.f32 %v1381_v22 }
 0x305   : > { %1384 = vmin.xlane.f32.xlu1 %v1383_v5 }
 0x31a   : > { %v2766_v6 = vpop.xlane.xlu0 %1299 }
 0x31b   : > { %vm1322_vm14 = vcmp.eq.f32.partialorder %v2717_v58, %v2766_v6 }
 0x31c   : > { %v1330_v54 = vsel %vm1322_vm14, %v2611_v33, 8 }
 0x31d   : > { %v1394_v45 = vsel %vm194_vm0, %v1330_v54, 2147483647 }
 0x31e   : > { %v1396_v8 = vshra.s32 %v1394_v45, 16  ;;  %v1395_v27 = vand.u32 65535, %v1394_v45 }
 0x320   : > { %v1398_v16 = vcvt.s32.f32 %v1396_v8  ;;  %v1397_v22 = vcvt.s32.f32 %v1395_v27 }
 0x322   : > { %1399 = vmin.xlane.f32.xlu0 %v1398_v16 }
 0x337   : > { %v2772_v52 = vpop.xlane.xlu1 %1302 }
 0x338   : > { %vm1323_vm15 = vcmp.eq.f32.partialorder %v2724_v41, %v2772_v52 }
 0x339   : > { %v1331_v61 = vsel %vm1323_vm15, %v2611_v33, 8 }
 0x33a   : > { %v1409_v13 = vsel %vm194_vm0, %v1331_v61, 2147483647 }
 0x33b   : > { %v1411_v17 = vshra.s32 %v1409_v13, 16  ;;  %v1410_v50 = vand.u32 65535, %v1409_v13 }
 0x33d   : > { %v1413_v55 = vcvt.s32.f32 %v1411_v17  ;;  %v1412_v61 = vcvt.s32.f32 %v1410_v50 }
 0x33f   : > { %1414 = vmin.xlane.f32.xlu1 %v1413_v55 }
 0x34f   : > { %v2778_v25 = vpop.xlane.xlu0 %1305 }
 0x350   : > { %vm1324_vm2 = vcmp.eq.f32.partialorder %v2731_v46, %v2778_v25 }
 0x351   : > { %v1332_v30 = vsel %vm1324_vm2, %v2611_v33, 8 }
 0x352   : > { %v1424_v10 = vsel %vm194_vm0, %v1332_v30, 2147483647 }
 0x353   : > { %v1426_v59 = vshra.s32 %v1424_v10, 16 }
 0x355   : > { %v1428_v0 = vcvt.s32.f32 %v1426_v59 }
 0x357   : > { %1429 = vmin.xlane.f32.xlu0 %v1428_v0 }
 0x35b   : > { %v1340_v60 = vpop.xlane.xlu0 %1339 }
 0x35c   : > { %vm1341_vm4 = vcmp.eq.f32.partialorder %v1338_v38, %v1340_v60  ;;  %v1346_v30 = vcvt.f32.s32 %v1340_v60 }
 0x35d   : > { %v1342_v3 = vsel %vm1341_vm4, %v1337_v43, inf }
 0x35e   : > { %1343 = vmin.xlane.f32.xlu0 %v1342_v3  ;;  %v1347_v59 = vshll.u32 %v1346_v30, 16 }
 0x366   : > { %v1370_v9 = vpop.xlane.xlu0 %1369 }
 0x367   : > { %vm1371_vm1 = vcmp.eq.f32.partialorder %v1368_v31, %v1370_v9  ;;  %v1380_v31 = vand.u32 65535, %v1379_v49  ;;  %v1425_v49 = vand.u32 65535, %v1424_v10  ;;  %v1376_v43 = vcvt.f32.s32 %v1370_v9 }
 0x368   : > { %v1372_v36 = vsel %vm1371_vm1, %v1367_v63, inf  ;;  %vm1510_vm1 = vcmask 0  }
 0x369   : > { %1373 = vmin.xlane.f32.xlu0 %v1372_v36  ;;  %v1382_v40 = vcvt.s32.f32 %v1380_v31  ;;  %v1377_v19 = vshll.u32 %v1376_v43, 16 }
 0x36e   : > { %v2784_v21 = vpop.xlane.xlu1 %1308 }
 0x36f   : > { %vm1325_vm6 = vcmp.eq.f32.partialorder %v2750_v24, %v2784_v21 }
 0x370   : > { %v1333_v15 = vsel %vm1325_vm6, %v2611_v33, 8 }
 0x371   : > { %v1439_v47 = vsel %vm194_vm0, %v1333_v15, 2147483647 }
 0x372   : > { %v1441_v7 = vshra.s32 %v1439_v47, 16  ;;  %v1440_v15 = vand.u32 65535, %v1439_v47 }
 0x374   : > { %v1443_v38 = vcvt.s32.f32 %v1441_v7  ;;  %v1442_v7 = vcvt.s32.f32 %v1440_v15 }
 0x376   : > { %1444 = vmin.xlane.f32.xlu1 %v1443_v38 }
 0x377   : > { %v1355_v62 = vpop.xlane.xlu1 %1354 }
 0x378   : > { %vm1356_vm7 = vcmp.eq.f32.partialorder %v1353_v26, %v1355_v62  ;;  %v1361_v35 = vcvt.f32.s32 %v1355_v62 }
 0x379   : > { %v1357_v28 = vsel %vm1356_vm7, %v1352_v14, inf }
 0x37a   : > { %1358 = vmin.xlane.f32.xlu1 %v1357_v28  ;;  %v1362_v28 = vshll.u32 %v1361_v35, 16 }
 0x392   : > { %v1385_v39 = vpop.xlane.xlu1 %1384 }
 0x393   : > { %vm1386_vm3 = vcmp.eq.f32.partialorder %v1383_v5, %v1385_v39  ;;  %v1427_v5 = vcvt.s32.f32 %v1425_v49  ;;  %v1391_v47 = vcvt.f32.s32 %v1385_v39 }
 0x394   : > { %v1387_v23 = vsel %vm1386_vm3, %v1382_v40, inf }
 0x395   : > { %1388 = vmin.xlane.f32.xlu1 %v1387_v23 }
 0x3af   : > { %v1400_v18 = vpop.xlane.xlu0 %1399 }
 0x3b0   : > { %vm1401_vm5 = vcmp.eq.f32.partialorder %v1398_v16, %v1400_v18 }
 0x3b1   : > { %v1402_v54 = vsel %vm1401_vm5, %v1397_v22, inf  ;;  %v1392_v22 = vshll.u32 %v1391_v47, 16 }
 0x3b2   : > { %1403 = vmin.xlane.f32.xlu0 %v1402_v54 }
 0x3cc   : > { %v2790_v8 = vpop.xlane.xlu1 %1414 }
 0x3cd   : > { %vm1416_vm8 = vcmp.eq.f32.partialorder %v1413_v55, %v2790_v8  ;;  %v1421_v30 = vcvt.f32.s32 %v2790_v8 }
 0x3ce   : > { %v1417_v26 = vsel %vm1416_vm8, %v1412_v61, inf  ;;  %v1406_v61 = vcvt.f32.s32 %v1400_v18 }
 0x3cf   : > { %1418 = vmin.xlane.f32.xlu1 %v1417_v26 }
 0x3d0   : > { %v1407_v49 = vshll.u32 %v1406_v61, 16 }
 0x3e4   : > { %v2793_v17 = vpop.xlane.xlu0 %1429 }
 0x3e5   : > { %vm1431_vm9 = vcmp.eq.f32.partialorder %v1428_v0, %v2793_v17  ;;  %v1436_v43 = vcvt.f32.s32 %v2793_v17 }
 0x3e6   : > { %v1432_v45 = vsel %vm1431_vm9, %v1427_v5, inf }
 0x3e7   : > { %1433 = vmin.xlane.f32.xlu0 %v1432_v45 }
 0x3eb   : > { %v1344_v16 = vpop.xlane.xlu0 %1343 }
 0x3ec   : > { %v1345_v53 = vcvt.f32.s32 %v1344_v16 }
 0x3ee   : > { %v1348_v13 = vadd.s32 %v1347_v59, %v1345_v53  ;;  %v1422_v59 = vshll.u32 %v1421_v30, 16 }
 0x3f0   : > { %vm1454_vm10 = vcmp.eq.s32.totalorder %v2611_v33, %v1348_v13 }
 0x3f1   : > { %v1462_v55 = vsel %vm1454_vm10, -3.4028235e+38, %v2690_v32 }
 0x3f2   : > { %v1470_v3 = vsel %vm194_vm0, %v1462_v55, -inf  ;;  %v1437_v55 = vshll.u32 %v1436_v43, 16 }
 0x3f3   : > { %1471 = vmax.xlane.f32.xlu0 %v1470_v3 }
 0x3f6   : > { %v1374_v10 = vpop.xlane.xlu0 %1373 }
 0x3f7   : > { %v1375_v63 = vcvt.f32.s32 %v1374_v10 }
 0x3f9   : > { %v1378_v36 = vadd.s32 %v1377_v19, %v1375_v63  ;;  %v1310_v63 = vadd.f32 %v2735_v48, %v2613_v20 }
 0x3fb   : > { %vm1456_vm11 = vcmp.eq.s32.totalorder %v2611_v33, %v1378_v36 }
 0x3fc   : > { %v1464_v0 = vsel %vm1456_vm11, -3.4028235e+38, %v2696_v37 }
 0x3fd   : > { %v1476_v60 = vsel %vm194_vm0, %v1464_v0, -inf }
 0x3fe   : > { %1477 = vmax.xlane.f32.xlu0 %v1476_v60 }
 0x403   : > { %v2802_v9 = vpop.xlane.xlu1 %1444 }
 0x404   : > { %vm1446_vm12 = vcmp.eq.f32.partialorder %v1443_v38, %v2802_v9  ;;  %v1451_v48 = vcvt.f32.s32 %v2802_v9  ;;  %v1313_v9 = vadd.f32 %v2760_v11, %v2651_v56 }
 0x405   : > { %v1447_v32 = vsel %vm1446_vm12, %v1442_v7, inf }
 0x406   : > { %1448 = vmin.xlane.f32.xlu1 %v1447_v32  ;;  %v1452_v7 = vshll.u32 %v1451_v48, 16 }
 0x407   : > { %v1359_v14 = vpop.xlane.xlu1 %1358 }
 0x408   : > { %v1360_v31 = vcvt.f32.s32 %v1359_v14 }
 0x40a   : > { %v1363_v40 = vadd.s32 %v1362_v28, %v1360_v31 }
 0x40c   : > { %vm1455_vm13 = vcmp.eq.s32.totalorder %v2611_v33, %v1363_v40 }
 0x40d   : > { %v1463_v37 = vsel %vm1455_vm13, -3.4028235e+38, %v2705_v57 }
 0x40e   : > { %v1473_v23 = vsel %vm194_vm0, %v1463_v37, -inf }
 0x40f   : > { %1474 = vmax.xlane.f32.xlu1 %v1473_v23 }
 0x422   : > { %v1389_v27 = vpop.xlane.xlu1 %1388 }
 0x423   : > { %v1390_v54 = vcvt.f32.s32 %v1389_v27  ;;  %v1315_v27 = vadd.f32 %v2772_v52, %v2663_v4 }
 0x425   : > { %v1393_v62 = vadd.s32 %v1392_v22, %v1390_v54  ;;  %v1316_v54 = vadd.f32 %v2778_v25, %v2669_v44 }
 0x427   : > { %vm1457_vm14 = vcmp.eq.s32.totalorder %v2611_v33, %v1393_v62 }
 0x428   : > { %v1465_v38 = vsel %vm1457_vm14, -3.4028235e+38, %v2711_v51 }
 0x429   : > { %v1479_v50 = vsel %vm194_vm0, %v1465_v38, -inf }
 0x42a   : > { %1480 = vmax.xlane.f32.xlu1 %v1479_v50 }
 0x43f   : > { %v1404_v26 = vpop.xlane.xlu0 %1403 }
 0x440   : > { %v1405_v5 = vcvt.f32.s32 %v1404_v26 }
 0x442   : > { %v1408_v57 = vadd.s32 %v1407_v49, %v1405_v5 }
 0x444   : > { %vm1458_vm15 = vcmp.eq.s32.totalorder %v2611_v33, %v1408_v57 }
 0x445   : > { %v1466_v39 = vsel %vm1458_vm15, -3.4028235e+38, %v2717_v58 }
 0x446   : > { %v1482_v45 = vsel %vm194_vm0, %v1466_v39, -inf }
 0x447   : > { %1483 = vmax.xlane.f32.xlu0 %v1482_v45 }
 0x45c   : > { %v1419_v16 = vpop.xlane.xlu1 %1418 }
 0x45d   : > { %v1420_v51 = vcvt.f32.s32 %v1419_v16 }
 0x45f   : > { %v1423_v53 = vadd.s32 %v1422_v59, %v1420_v51 }
 0x461   : > { %vm1459_vm2 = vcmp.eq.s32.totalorder %v2611_v33, %v1423_v53 }
 0x462   : > { %v1467_v18 = vsel %vm1459_vm2, -3.4028235e+38, %v2724_v41 }
 0x463   : > { %v1485_v13 = vsel %vm194_vm0, %v1467_v18, -inf }
 0x464   : > { %1486 = vmax.xlane.f32.xlu1 %v1485_v13 }
 0x474   : > { %v1434_v58 = vpop.xlane.xlu0 %1433 }
 0x475   : > { %v1435_v3 = vcvt.f32.s32 %v1434_v58 }
 0x477   : > { %v1438_v10 = vadd.s32 %v1437_v55, %v1435_v3 }
 0x479   : > { %vm1460_vm4 = vcmp.eq.s32.totalorder %v2611_v33, %v1438_v10 }
 0x47a   : > { %v1468_v8 = vsel %vm1460_vm4, -3.4028235e+38, %v2731_v46  ;;  %v1312_v46 = vadd.f32 %v2741_v29, %v2634_v2  ;;  %v1311_v2 = vadd.f32 %v2754_v34, %v2645_v42 }
 0x47b   : > { %v1488_v19 = vsel %vm194_vm0, %v1468_v8, -inf }
 0x47c   : > { %1489 = vmax.xlane.f32.xlu0 %v1488_v19 }
 0x480   : > { %v1472_v41 = vpop.xlane.xlu0 %1471 }
 0x481   : > { %v1494_v36 = vadd.f32 %v1472_v41, %v1310_v63 }
 0x483   : > { %v1502_v17 = vmul.f32 0.33333334, %v1494_v36 }
 0x485   : > { %1511 = vst.msk [vmem:[%s2828_s17] sm:$0x1] %vm1510_vm1, %v1502_v17 }
 0x48b   : > { %v1478_v0 = vpop.xlane.xlu0 %1477 }
 0x48c   : > { %v1496_v60 = vadd.f32 %v1478_v0, %v1312_v46 }
 0x48e   : > { %v1504_v20 = vmul.f32 0.33333334, %v1496_v60 }
 0x490   : > { %1513 = vst.msk [vmem:[%s2828_s17 + $0x2] sm:$0x1] %vm1510_vm1, %v1504_v20 }
 0x493   : > { %v1449_v15 = vpop.xlane.xlu1 %1448 }
 0x494   : > { %v1450_v35 = vcvt.f32.s32 %v1449_v15 }
 0x496   : > { %v1453_v32 = vadd.s32 %v1452_v7, %v1450_v35 }
 0x498   : > { %vm1461_vm6 = vcmp.eq.s32.totalorder %v2611_v33, %v1453_v32 }
 0x499   : > { %v1469_v14 = vsel %vm1461_vm6, -3.4028235e+38, %v2750_v24  ;;  %v1314_v24 = vadd.f32 %v2766_v6, %v2657_v12  ;;  %v1317_v6 = vadd.f32 %v2784_v21, %v2676_v1 }
 0x49a   : > { %v1491_v28 = vsel %vm194_vm0, %v1469_v14, -inf }
 0x49b   : > { %1492 = vmax.xlane.f32.xlu1 %v1491_v28 }
 0x49c   : > { %v1475_v29 = vpop.xlane.xlu1 %1474 }
 0x49d   : > { %v1495_v31 = vadd.f32 %v1475_v29, %v1311_v2 }
 0x49f   : > { %v1503_v40 = vmul.f32 0.33333334, %v1495_v31 }
 0x4a1   : > { %1512 = vst.msk [vmem:[%s2828_s17 + $0x1] sm:$0x1] %vm1510_vm1, %v1503_v40 }
 0x4b7   : > { %v1481_v37 = vpop.xlane.xlu1 %1480 }
 0x4b8   : > { %v1497_v33 = vadd.f32 %v1481_v37, %v1313_v9 }
 0x4ba   : > { %v1505_v23 = vmul.f32 0.33333334, %v1497_v33 }
 0x4bc   : > { %1514 = vst.msk [vmem:[%s2828_s17 + $0x3] sm:$0x1] %vm1510_vm1, %v1505_v23 }
 0x4d4   : > { %v1484_v42 = vpop.xlane.xlu0 %1483 }
 0x4d5   : > { %v1498_v34 = vadd.f32 %v1484_v42, %v1314_v24 }
 0x4d7   : > { %v1506_v47 = vmul.f32 0.33333334, %v1498_v34 }
 0x4d9   : > { %1515 = vst.msk [vmem:[%s2828_s17 + $0x4] sm:$0x1] %vm1510_vm1, %v1506_v47 }
 0x4f1   : > { %v1487_v22 = vpop.xlane.xlu1 %1486 }
 0x4f2   : > { %v1499_v56 = vadd.f32 %v1487_v22, %v1315_v27 }
 0x4f4   : > { %v1507_v11 = vmul.f32 0.33333334, %v1499_v56 }
 0x4f6   : > { %1516 = vst.msk [vmem:[%s2828_s17 + $0x5] sm:$0x1] %vm1510_vm1, %v1507_v11 }
 0x509   : > { %v1490_v62 = vpop.xlane.xlu0 %1489 }
 0x50a   : > { %v1500_v38 = vadd.f32 %v1490_v62, %v1316_v54 }
 0x50c   : > { %v1508_v12 = vmul.f32 0.33333334, %v1500_v38 }
 0x50e   : > { %1517 = vst.msk [vmem:[%s2828_s17 + $0x6] sm:$0x1] %vm1510_vm1, %v1508_v12 }
 0x528   : > { %v1493_v50 = vpop.xlane.xlu1 %1492 }
 0x529   : > { %v1501_v61 = vadd.f32 %v1493_v50, %v1317_v6 }
 0x52b   : > { %v1509_v26 = vmul.f32 0.33333334, %v1501_v61 }
 0x52d   : > { %1518 = vst.msk [vmem:[%s2828_s17 + $0x7] sm:$0x1] %vm1510_vm1, %v1509_v26 }
 0x52e PF: > { %s11_s8 = sadd.s32 1, %s1668_s8   ;;  %s2883_s6 = smov %s1664_s7 }
 0x52f   : > { %p8_p5 = scmp.ge.s32.totalorder %s11_s8, 4   ;;  %s2884_s7 = smov %s2886_s9 }
 0x531   :  { %10 = sbr.rel (!%p8_p5) target bundleno = 2 (0x2), region = 54 }

// kernel: senet_forward.3
= control target key start
LH: loop header
LB: loop body
LE: loop exit
PB: predicated region body
PF: predicated region fallthrough
CT: control target
= control target key end

     0   :  { %s462_s9 = smov 0   ;;  %s464_s10 = smov 0   ;;  %s495_s0 = inlined_call_operand.vmem [shape: f32[2,8,216], index: 0, kind: input, shape index: {}]   ;;  %s496_s1 = inlined_call_operand.vmem [shape: f32[2,8,1], index: 1, kind: input, shape index: {}]   ;;  %s497_s2 = inlined_call_operand.vmem [shape: f32[2,8,216], index: 2, kind: output, shape index: {}]  }
   0x1   :  { %s466_s11 = smov 0  }
   0x2 LB: > { %s31_s12 = sadd.s32 1, %s440_s10  ;;  %p386_p0 = scmp.ge.s32.totalorder %s444_s11, 1  ;;  %s444_s11 = sphi %s466_s11, %s12_s11   ;;  %s440_s10 = sphi %s464_s10, %s499_s10   ;;  %s436_s9 = sphi %s462_s9, %s498_s9  }
   0x3   : > { %p33_p1 = scmp.ge.s32.totalorder %s31_s12, 2  ;;  %p162_p2 = scmp.lt.s32.totalorder %s444_s11, 3 }
   0x5   : > { %s501_s12 = smov (%p33_p1, %s31_s12), 0  ;;  %p163_p3 = pnand %p386_p0, %p162_p2 }
   0x6   : > { %p208_p4 = scmp.lt.s32.totalorder (!%p163_p3), %s436_s9, 1  ;;  %v446_v0 = vmov (!%p163_p3), 0   ;;  %vm253_vm0 = vcmask (!%p163_p3), 719872  }
   0x7   : > { %166 = sbr.rel (%p163_p3) target bundleno = 149 (0x95), region = 28  ;;  %421 = vset.pattern.permute.xlu0 (!%p163_p3), %v446_v0 }
   0xe   : > { %s503_s9 = smov (!%p208_p4, %s436_s9), 1 }
   0xf   : > { %s389_s13 = sshll.u32 %s503_s9, 3  ;;  %s394_s17 = sshll.u32 %s503_s9, 4 }
  0x10   : > { %s227_s16 = scalar_lea.vmem %s496_s1, %s389_s13  ;;  %s219_s20 = scalar_lea.vmem %s495_s0, %s394_s17 }
  0x11   : > { %v244_v1 = vld [vmem:[%s227_s16] sm:$0xff]  ;;  %v243_v3 = vld [vmem:[%s219_s20 + $0x8] sm:$0xff]  ;;  %s240_s23 = scalar_lea.vmem %s497_s2, %s394_s17 }
  0x12   : > { %247 = vperm.xlu0 %421, %v244_v1   ;;  %v242_v2 = vld [vmem:[%s219_s20] sm:$0xff] }
  0x91   : > { %v248_v4 = vpop.permute.xlu0 %247 }
  0x92   : > { %v250_v5 = vmul.f32 %v248_v4, %v242_v2  ;;  %v251_v6 = vmul.f32 %v248_v4, %v243_v3 }
  0x94   : > { %252 = vst [vmem:[%s240_s23] sm:$0xff] %v250_v5  ;;  %254 = vst.msk [vmem:[%s240_s23 + $0x8] sm:$0xff] %vm253_vm0, %v251_v6 }
  0x95 PF: > { %s12_s11 = sadd.s32 1, %s444_s11   ;;  %s498_s9 = smov %s440_s10 }
  0x96   : > { %p9_p5 = scmp.ge.s32.totalorder %s12_s11, 4   ;;  %s499_s10 = smov %s501_s12 }
  0x98   :  { %11 = sbr.rel (!%p9_p5) target bundleno = 2 (0x2), region = 61 }

</bundles_post_ra>
